<compile_context>
chip_gen: v7x
topology: tpu7x:2x2x1
jax: 0.10.0
libtpu: 0.0.40
codegen_flags: <defaults>
</compile_context>

<pallas_src>
import functools

import jax
import jax.numpy as jnp
from jax.experimental import pallas as pl
from jax.experimental.pallas import tpu as pltpu

_BN_EPS = 1e-5


# --------------------------- in-kernel elementwise helpers ------------------

def _erf(x):
    # Abramowitz & Stegun 7.1.26 rational approximation, |err| < 1.5e-7, plus
    # ~1e-4 from the EUP approximate reciprocal (damped by exp(-x^2)).  Uses
    # only exp/mul/add/select/vrcp so it always lowers on the Mosaic backend.
    a1, a2, a3, a4, a5 = (0.254829592, -0.284496736, 1.421413741,
                          -1.453152027, 1.061405429)
    p = 0.3275911
    sign = jnp.where(x >= 0.0, 1.0, -1.0)
    ax = jnp.abs(x)
    t = pl.reciprocal(1.0 + p * ax, approx=True)     # EUP slot, not VPU divide
    poly = ((((a5 * t + a4) * t + a3) * t + a2) * t + a1) * t
    return sign * (1.0 - poly * jnp.exp(-ax * ax))


def _gelu(x):
    # torch.nn.GELU() default = exact (erf-based) GELU.
    return 0.5 * x * (1.0 + _erf(x * 0.7071067811865476))


def _softplus(x):
    # torch.nn.Softplus(beta=1, threshold=20).  log(1+exp) instead of log1p:
    # for x < ~-15 this underflows to 0 instead of ~exp(x) (<3e-7 deviation).
    safe = jnp.minimum(x, 20.0)
    return jnp.where(x > 20.0, x, jnp.log(1.0 + jnp.exp(safe)))


# ----------------------------------------------------------- Pallas kernel --

def _autoencoder_kernel(x_ref, w1_ref, w2_ref, wms_ref, wm2_ref, wl_ref,
                        b1_ref, b2_ref, bms_ref, bm2_ref, bl_ref,
                        sel_ref, out_ref, *, batch):
    M, _ = x_ref.shape              # M = Tb * batch folded matmul rows
    Tb = M // batch
    Z = w2_ref.shape[1]

    def bn(v):
        # Per-time-step BatchNorm1d (training mode, biased variance); the
        # affine (gamma/beta) is folded into the following Linear at trace
        # time, so only the normalization happens here.  Rows are t-major, so
        # the (M, F) <-> (Tb, B, F) views are leading-dim splits only.
        f = v.shape[-1]
        v3 = v.reshape(Tb, batch, f)
        mean = jnp.mean(v3, axis=1, keepdims=True)
        var = jnp.mean(jnp.square(v3 - mean), axis=1, keepdims=True)
        return ((v3 - mean) * jax.lax.rsqrt(var + _BN_EPS)).reshape(M, f)

    def linear(v, w_ref, b_ref):
        return (jnp.dot(v, w_ref[...], preferred_element_type=jnp.float32)
                + b_ref[...])

    X = x_ref[...]                                         # (M, D)

    # prior_encoder: BN -> Linear -> GELU -> Linear -> Softplus
    h = _gelu(linear(bn(X), w1_ref, b1_ref))               # (M, H)
    ebd = _softplus(linear(h, w2_ref, b2_ref))             # (M, Z)

    # prior_encoder_mu hidden layer + prior_encoder_sig fused: both consume
    # the same normalized ebd (identical batch stats); their BN affines are
    # folded into [Wm1' | Ws'] -> one (Z -> 2Z) matmul.
    ms = linear(bn(ebd), wms_ref, bms_ref)                 # (M, 2Z)
    hm = _gelu(ms[:, 0:Z])                                 # mu hidden
    sig = _softplus(ms[:, Z:2 * Z])                        # sig branch output
    mu = _softplus(linear(hm, wm2_ref, bm2_ref))           # (M, Z)

    # LN(sig - mu): BN -> Linear -> Softplus
    E = _softplus(linear(bn(sig - mu), wl_ref, bl_ref))    # (M, Z)

    # Lane-dense fused output built entirely on the MXU (no lane concats, no
    # per-lane broadcasts, no narrow masked stores):
    #   sel[0] = S_mu  : [i, i]            = 1 -> mu lands in lanes [0, Z)
    #   sel[1] = K_rep : [i, Z + i*Z + j]  = 1 -> left [., Z+i*Z+j] = E[., i]
    #   sel[2] = K_tile: [j, Z + i*Z + j]  = 1 -> right[., Z+i*Z+j] = E[., j]
    # so lanes [Z, Z+Z*Z) of left*right hold cov[., i, j] = E[., i]*E[., j],
    # all other lanes are 0, and the write is one unmasked 128-lane store.
    dot = lambda a, b: jnp.dot(a, b, preferred_element_type=jnp.float32)
    out_ref[...] = (dot(mu, sel_ref[0])
                    + dot(E, sel_ref[1]) * dot(E, sel_ref[2]))


# -------------------------------------------------------------- wrapper -----

def _choose_t_block(T, B, D, out_w, vmem_budget_bytes=24 * 1024 * 1024):
    """Largest divisor Tb of T whose (double-buffered) x + output blocks fit
    the VMEM budget.  At small sizes this is Tb = T -> grid=(1,): the grid is
    a serial loop on single-TensorCore chips, so one step with all T*B rows
    avoids per-step pipeline overhead and maximizes matmul M."""
    per_row_bytes = (D + out_w) * 4 * 2        # f32, 2x double-buffering
    for tb in sorted((d for d in range(1, T + 1) if T % d == 0), reverse=True):
        if tb * B * per_row_bytes <= vmem_budget_bytes:
            return tb
    return 1


@jax.jit
def _forward_impl(x, params):
    B, T, D = x.shape
    Z = params["W2"].shape[1]
    out_w = ((Z + Z * Z + 127) // 128) * 128   # lane-dense fused output width

    hp = functools.partial(jnp.dot, precision=jax.lax.Precision.HIGHEST,
                           preferred_element_type=jnp.float32)

    # ---- fold every BatchNorm affine (gamma/beta) into the next Linear ----
    # BN(x) @ W + b  ==  xhat @ (diag(g) W) + (beta @ W + b)
    W1f = params["W1"] * params["g1"].T
    b1f = hp(params["be1"], params["W1"]) + params["b1"]
    Wm1f = params["Wm1"] * params["gm"].T
    bm1f = hp(params["bem"], params["Wm1"]) + params["bm1"]
    Wsf = params["Ws"] * params["gs"].T
    bsf = hp(params["bes"], params["Ws"]) + params["bs"]
    Wlf = params["Wl"] * params["gl"].T
    blf = hp(params["bel"], params["Wl"]) + params["bl"]

    # ---- fuse mu-hidden and sig branches into one (Z -> 2Z) matmul ----
    Wms = jnp.concatenate([Wm1f, Wsf], axis=1)             # (Z, 2Z)
    bms = jnp.concatenate([bm1f, bsf], axis=1)             # (1, 2Z)

    # ---- constant selection matrices for the fused lane-dense output ----
    eye = jnp.eye(Z, dtype=jnp.float32)
    s_mu = jnp.zeros((Z, out_w), jnp.float32).at[:, 0:Z].set(eye)
    k_rep = jnp.zeros((Z, out_w), jnp.float32).at[:, Z:Z + Z * Z].set(
        jnp.repeat(eye, Z, axis=1))                        # [i, i*Z + j] = 1
    k_tile = jnp.zeros((Z, out_w), jnp.float32).at[:, Z:Z + Z * Z].set(
        jnp.tile(eye, (1, Z)))                             # [j, i*Z + j] = 1
    sel = jnp.stack([s_mu, k_rep, k_tile])                 # (3, Z, out_w)

    # time-major, sequence folded into the matmul M dimension
    x2d = jnp.transpose(x, (1, 0, 2)).reshape(T * B, D)

    Tb = _choose_t_block(T, B, D, out_w)
    M = Tb * B

    consts = (W1f, params["W2"], Wms, params["Wm2"], Wlf,
              b1f, params["b2"], bms, params["bm2"], blf, sel)

    in_specs = ([pl.BlockSpec((M, D), lambda t: (t, 0))]
                + [pl.BlockSpec(c.shape, lambda t, n=c.ndim: (0,) * n)
                   for c in consts])

    fused = pl.pallas_call(
        functools.partial(_autoencoder_kernel, batch=B),
        out_shape=jax.ShapeDtypeStruct((T * B, out_w), jnp.float32),
        grid_spec=pltpu.PrefetchScalarGridSpec(
            num_scalar_prefetch=0,
            grid=(T // Tb,),
            in_specs=in_specs,
            out_specs=pl.BlockSpec((M, out_w), lambda t: (t, 0))),
        compiler_params=pltpu.CompilerParams(
            dimension_semantics=("parallel",),
            vmem_limit_bytes=32 * 1024 * 1024),
    )(x2d, *consts)

    mu = fused[:, 0:Z].reshape(T, B, Z)                    # cheap XLA slices
    cov = fused[:, Z:Z + Z * Z].reshape(T, B, Z, Z)
    return mu, cov


def autoencoder_forward(x, params):
    """x: (B, T, input_size) f32.  Returns (list_mu, list_cov) like PyTorch."""
    mu, cov = _forward_impl(x, params)
    T = x.shape[1]
    return [mu[t] for t in range(T)], [cov[t] for t in range(T)]


# ------------------------------------------------- pure-JAX reference -------

def _bn_ref(x, gamma, beta):
    mean = jnp.mean(x, axis=0, keepdims=True)
    var = jnp.mean(jnp.square(x - mean), axis=0, keepdims=True)
    return (x - mean) * jax.lax.rsqrt(var + _BN_EPS) * gamma + beta


def _gelu_ref(x):
    return 0.5 * x * (1.0 + jax.lax.erf(x * 0.7071067811865476))


def _softplus_ref(x):
    return jnp.where(x > 20.0, x, jnp.log1p(jnp.exp(jnp.minimum(x, 20.0))))


def reference_forward(x, params):
    hp = functools.partial(jnp.dot, precision=jax.lax.Precision.HIGHEST,
                           preferred_element_type=jnp.float32)
    B, T, D = x.shape
    mus, covs = [], []
    for t in range(T):
        X = x[:, t, :]
        h = _bn_ref(X, params["g1"], params["be1"])
        h = _gelu_ref(hp(h, params["W1"]) + params["b1"])
        ebd = _softplus_ref(hp(h, params["W2"]) + params["b2"])
        m = _bn_ref(ebd, params["gm"], params["bem"])
        m = _gelu_ref(hp(m, params["Wm1"]) + params["bm1"])
        mu = _softplus_ref(hp(m, params["Wm2"]) + params["bm2"])
        s = _bn_ref(ebd, params["gs"], params["bes"])
        sig = _softplus_ref(hp(s, params["Ws"]) + params["bs"])
        d = _bn_ref(sig - mu, params["gl"], params["bel"])
        E = _softplus_ref(hp(d, params["Wl"]) + params["bl"])
        mus.append(mu)
        covs.append(E[:, :, None] * E[:, None, :])
    return mus, covs


# --------------------------------------------------------- param init -------

def init_params(key, input_size, hidden_size, z_size):
    def linear(k, fin, fout):
        kw, kb = jax.random.split(k)
        bound = float(fin) ** -0.5            # matches torch.nn.Linear bound
        W = jax.random.uniform(kw, (fin, fout), jnp.float32, -bound, bound)
        b = jax.random.uniform(kb, (1, fout), jnp.float32, -bound, bound)
        return W, b

    ks = jax.random.split(key, 6)
    W1, b1 = linear(ks[0], input_size, hidden_size)
    W2, b2 = linear(ks[1], hidden_size, z_size)
    Wm1, bm1 = linear(ks[2], z_size, z_size)
    Wm2, bm2 = linear(ks[3], z_size, z_size)
    Ws, bs = linear(ks[4], z_size, z_size)
    Wl, bl = linear(ks[5], z_size, z_size)

    ones = lambda n: jnp.ones((1, n), jnp.float32)     # BN gamma (torch default)
    zeros = lambda n: jnp.zeros((1, n), jnp.float32)   # BN beta  (torch default)

    return dict(
        g1=ones(input_size), be1=zeros(input_size), W1=W1, b1=b1, W2=W2, b2=b2,
        gm=ones(z_size), bem=zeros(z_size), Wm1=Wm1, bm1=bm1, Wm2=Wm2, bm2=bm2,
        gs=ones(z_size), bes=zeros(z_size), Ws=Ws, bs=bs,
        gl=ones(z_size), bel=zeros(z_size), Wl=Wl, bl=bl)


# --------------------------------------------------------------- main -------

if __name__ == "__main__":
    # B = 8 keeps the (M, F) <-> (Tb, B, F) BatchNorm views sublane-exact.
    B, T = 8, 8
    input_size, hidden_size, z_size = 16, 32, 8

    key = jax.random.PRNGKey(0)
    kx, kp = jax.random.split(key)
    x = jax.random.normal(kx, (B, T, input_size), jnp.float32)
    params = init_params(kp, input_size, hidden_size, z_size)

    list_mu, list_cov = autoencoder_forward(x, params)
    jax.block_until_ready(list_mu)
    jax.block_until_ready(list_cov)

    ref_mu, ref_cov = reference_forward(x, params)
    for t in range(T):
        assert list_mu[t].shape == (B, z_size)
        assert list_cov[t].shape == (B, z_size, z_size)
        assert jnp.allclose(list_mu[t], ref_mu[t], rtol=5e-3, atol=5e-3), t
        assert jnp.allclose(list_cov[t], ref_cov[t], rtol=5e-3, atol=5e-3), t

    print("KERNEL_OK")
</pallas_src>

<mosaic_0001>
module attributes {stable_mosaic.version = 11 : i64} {
  func.func @_autoencoder_kernel(%arg0: i32, %arg1: memref<64x16xf32, #tpu.memory_space<vmem>>, %arg2: memref<16x32xf32, #tpu.memory_space<vmem>>, %arg3: memref<32x8xf32, #tpu.memory_space<vmem>>, %arg4: memref<8x16xf32, #tpu.memory_space<vmem>>, %arg5: memref<8x8xf32, #tpu.memory_space<vmem>>, %arg6: memref<8x8xf32, #tpu.memory_space<vmem>>, %arg7: memref<1x32xf32, #tpu.memory_space<vmem>>, %arg8: memref<1x8xf32, #tpu.memory_space<vmem>>, %arg9: memref<1x16xf32, #tpu.memory_space<vmem>>, %arg10: memref<1x8xf32, #tpu.memory_space<vmem>>, %arg11: memref<1x8xf32, #tpu.memory_space<vmem>>, %arg12: memref<3x8x128xf32, #tpu.memory_space<vmem>>, %arg13: memref<64x128xf32, #tpu.memory_space<vmem>>) attributes {dimension_semantics = [#tpu.dimension_semantics<parallel>], iteration_bounds = array<i64: 1>, scalar_prefetch = 0 : i64, scratch_operands = 0 : i64, tpu.core_type = #tpu.core_type<tc>, window_params = [{transform_indices = @transform_0, window_bounds = array<i64: 64, 16>}, {pipeline_mode = #tpu.pipeline_mode<synchronous>, transform_indices = @transform_1, window_bounds = array<i64: 16, 32>}, {pipeline_mode = #tpu.pipeline_mode<synchronous>, transform_indices = @transform_2, window_bounds = array<i64: 32, 8>}, {pipeline_mode = #tpu.pipeline_mode<synchronous>, transform_indices = @transform_3, window_bounds = array<i64: 8, 16>}, {pipeline_mode = #tpu.pipeline_mode<synchronous>, transform_indices = @transform_4, window_bounds = array<i64: 8, 8>}, {pipeline_mode = #tpu.pipeline_mode<synchronous>, transform_indices = @transform_5, window_bounds = array<i64: 8, 8>}, {pipeline_mode = #tpu.pipeline_mode<synchronous>, transform_indices = @transform_6, window_bounds = array<i64: 1, 32>}, {pipeline_mode = #tpu.pipeline_mode<synchronous>, transform_indices = @transform_7, window_bounds = array<i64: 1, 8>}, {pipeline_mode = #tpu.pipeline_mode<synchronous>, transform_indices = @transform_8, window_bounds = array<i64: 1, 16>}, {pipeline_mode = #tpu.pipeline_mode<synchronous>, transform_indices = @transform_9, window_bounds = array<i64: 1, 8>}, {pipeline_mode = #tpu.pipeline_mode<synchronous>, transform_indices = @transform_10, window_bounds = array<i64: 1, 8>}, {pipeline_mode = #tpu.pipeline_mode<synchronous>, transform_indices = @transform_11, window_bounds = array<i64: 3, 8, 128>}, {transform_indices = @transform_12, window_bounds = array<i64: 64, 128>}]} {
    %c0 = arith.constant 0 : index
    %c0_0 = arith.constant 0 : index
    %0 = vector.load %arg1[%c0, %c0_0] : memref<64x16xf32, #tpu.memory_space<vmem>>, vector<64x16xf32>
    %1 = vector.shape_cast %0 : vector<64x16xf32> to vector<8x8x16xf32>
    %cst = arith.constant dense<0.000000e+00> : vector<8x16xf32>
    %2 = vector.multi_reduction <add>, %1, %cst [1] : vector<8x8x16xf32> to vector<8x16xf32>
    %3 = vector.shape_cast %2 : vector<8x16xf32> to vector<8x1x16xf32>
    %cst_1 = arith.constant 8.000000e+00 : f32
    %4 = vector.broadcast %cst_1 : f32 to vector<8x1x16xf32>
    %5 = arith.divf %3, %4 : vector<8x1x16xf32>
    %6 = vector.broadcast %5 : vector<8x1x16xf32> to vector<8x8x16xf32>
    %7 = arith.subf %1, %6 : vector<8x8x16xf32>
    %8 = arith.mulf %7, %7 : vector<8x8x16xf32>
    %cst_2 = arith.constant dense<0.000000e+00> : vector<8x16xf32>
    %9 = vector.multi_reduction <add>, %8, %cst_2 [1] : vector<8x8x16xf32> to vector<8x16xf32>
    %10 = vector.shape_cast %9 : vector<8x16xf32> to vector<8x1x16xf32>
    %cst_3 = arith.constant 8.000000e+00 : f32
    %11 = vector.broadcast %cst_3 : f32 to vector<8x1x16xf32>
    %12 = arith.divf %10, %11 : vector<8x1x16xf32>
    %13 = vector.broadcast %5 : vector<8x1x16xf32> to vector<8x8x16xf32>
    %14 = arith.subf %1, %13 : vector<8x8x16xf32>
    %cst_4 = arith.constant 9.99999974E-6 : f32
    %15 = vector.broadcast %cst_4 : f32 to vector<8x1x16xf32>
    %16 = arith.addf %12, %15 : vector<8x1x16xf32>
    %17 = math.rsqrt %16 : vector<8x1x16xf32>
    %18 = vector.broadcast %17 : vector<8x1x16xf32> to vector<8x8x16xf32>
    %19 = arith.mulf %14, %18 : vector<8x8x16xf32>
    %20 = vector.shape_cast %19 : vector<8x8x16xf32> to vector<64x16xf32>
    %c0_5 = arith.constant 0 : index
    %c0_6 = arith.constant 0 : index
    %21 = vector.load %arg2[%c0_5, %c0_6] : memref<16x32xf32, #tpu.memory_space<vmem>>, vector<16x32xf32>
    %cst_7 = arith.constant dense<0.000000e+00> : vector<64x32xf32>
    %22 = tpu.matmul %20, %21, %cst_7 {dimension_numbers = #tpu.dot_dimension_numbers<[1], [0], [0], [1], [0, 0, 1, 1], [], []>} : vector<64x16xf32>, vector<16x32xf32>, vector<64x32xf32> -> vector<64x32xf32>
    %c0_8 = arith.constant 0 : index
    %c0_9 = arith.constant 0 : index
    %23 = vector.load %arg7[%c0_8, %c0_9] : memref<1x32xf32, #tpu.memory_space<vmem>>, vector<1x32xf32>
    %24 = vector.broadcast %23 : vector<1x32xf32> to vector<64x32xf32>
    %25 = arith.addf %22, %24 : vector<64x32xf32>
    %cst_10 = arith.constant 5.000000e-01 : f32
    %26 = vector.broadcast %cst_10 : f32 to vector<64x32xf32>
    %27 = arith.mulf %26, %25 : vector<64x32xf32>
    %cst_11 = arith.constant 0.707106769 : f32
    %28 = vector.broadcast %cst_11 : f32 to vector<64x32xf32>
    %29 = arith.mulf %25, %28 : vector<64x32xf32>
    %cst_12 = arith.constant 0.000000e+00 : f32
    %30 = vector.broadcast %cst_12 : f32 to vector<64x32xf32>
    %31 = arith.cmpf oge, %29, %30 : vector<64x32xf32>
    %cst_13 = arith.constant 1.000000e+00 : f32
    %cst_14 = arith.constant -1.000000e+00 : f32
    %32 = vector.broadcast %cst_13 : f32 to vector<64x32xf32>
    %33 = vector.broadcast %cst_14 : f32 to vector<64x32xf32>
    %34 = arith.select %31, %32, %33 : vector<64x32xi1>, vector<64x32xf32>
    %35 = math.absf %29 : vector<64x32xf32>
    %cst_15 = arith.constant 0.327591091 : f32
    %36 = vector.broadcast %cst_15 : f32 to vector<64x32xf32>
    %37 = arith.mulf %36, %35 : vector<64x32xf32>
    %cst_16 = arith.constant 1.000000e+00 : f32
    %38 = vector.broadcast %cst_16 : f32 to vector<64x32xf32>
    %39 = arith.addf %38, %37 : vector<64x32xf32>
    %40 = tpu.reciprocal %39 {approx = true} : vector<64x32xf32> -> vector<64x32xf32>
    %cst_17 = arith.constant 1.06140542 : f32
    %41 = vector.broadcast %cst_17 : f32 to vector<64x32xf32>
    %42 = arith.mulf %41, %40 : vector<64x32xf32>
    %cst_18 = arith.constant -1.45315206 : f32
    %43 = vector.broadcast %cst_18 : f32 to vector<64x32xf32>
    %44 = arith.addf %42, %43 : vector<64x32xf32>
    %45 = arith.mulf %44, %40 : vector<64x32xf32>
    %cst_19 = arith.constant 1.42141378 : f32
    %46 = vector.broadcast %cst_19 : f32 to vector<64x32xf32>
    %47 = arith.addf %45, %46 : vector<64x32xf32>
    %48 = arith.mulf %47, %40 : vector<64x32xf32>
    %cst_20 = arith.constant -0.284496725 : f32
    %49 = vector.broadcast %cst_20 : f32 to vector<64x32xf32>
    %50 = arith.addf %48, %49 : vector<64x32xf32>
    %51 = arith.mulf %50, %40 : vector<64x32xf32>
    %cst_21 = arith.constant 0.254829586 : f32
    %52 = vector.broadcast %cst_21 : f32 to vector<64x32xf32>
    %53 = arith.addf %51, %52 : vector<64x32xf32>
    %54 = arith.mulf %53, %40 : vector<64x32xf32>
    %cst_22 = arith.constant 0.000000e+00 : f32
    %55 = vector.broadcast %cst_22 : f32 to vector<64x32xf32>
    %56 = arith.subf %55, %35 : vector<64x32xf32>
    %57 = arith.mulf %56, %35 : vector<64x32xf32>
    %58 = math.exp %57 : vector<64x32xf32>
    %59 = arith.mulf %54, %58 : vector<64x32xf32>
    %cst_23 = arith.constant 1.000000e+00 : f32
    %60 = vector.broadcast %cst_23 : f32 to vector<64x32xf32>
    %61 = arith.subf %60, %59 : vector<64x32xf32>
    %62 = arith.mulf %34, %61 : vector<64x32xf32>
    %cst_24 = arith.constant 1.000000e+00 : f32
    %63 = vector.broadcast %cst_24 : f32 to vector<64x32xf32>
    %64 = arith.addf %63, %62 : vector<64x32xf32>
    %65 = arith.mulf %27, %64 : vector<64x32xf32>
    %c0_25 = arith.constant 0 : index
    %c0_26 = arith.constant 0 : index
    %66 = vector.load %arg3[%c0_25, %c0_26] : memref<32x8xf32, #tpu.memory_space<vmem>>, vector<32x8xf32>
    %cst_27 = arith.constant dense<0.000000e+00> : vector<64x8xf32>
    %67 = tpu.matmul %65, %66, %cst_27 {dimension_numbers = #tpu.dot_dimension_numbers<[1], [0], [0], [1], [0, 0, 1, 1], [], []>} : vector<64x32xf32>, vector<32x8xf32>, vector<64x8xf32> -> vector<64x8xf32>
    %c0_28 = arith.constant 0 : index
    %c0_29 = arith.constant 0 : index
    %68 = vector.load %arg8[%c0_28, %c0_29] : memref<1x8xf32, #tpu.memory_space<vmem>>, vector<1x8xf32>
    %69 = vector.broadcast %68 : vector<1x8xf32> to vector<64x8xf32>
    %70 = arith.addf %67, %69 : vector<64x8xf32>
    %cst_30 = arith.constant 2.000000e+01 : f32
    %71 = vector.broadcast %cst_30 : f32 to vector<64x8xf32>
    %72 = arith.minimumf %70, %71 : vector<64x8xf32>
    %cst_31 = arith.constant 2.000000e+01 : f32
    %73 = vector.broadcast %cst_31 : f32 to vector<64x8xf32>
    %74 = arith.cmpf ogt, %70, %73 : vector<64x8xf32>
    %75 = math.exp %72 : vector<64x8xf32>
    %cst_32 = arith.constant 1.000000e+00 : f32
    %76 = vector.broadcast %cst_32 : f32 to vector<64x8xf32>
    %77 = arith.addf %76, %75 : vector<64x8xf32>
    %78 = math.log %77 : vector<64x8xf32>
    %79 = arith.select %74, %70, %78 : vector<64x8xi1>, vector<64x8xf32>
    %80 = vector.shape_cast %79 : vector<64x8xf32> to vector<8x8x8xf32>
    %cst_33 = arith.constant dense<0.000000e+00> : vector<8x8xf32>
    %81 = vector.multi_reduction <add>, %80, %cst_33 [1] : vector<8x8x8xf32> to vector<8x8xf32>
    %82 = vector.shape_cast %81 : vector<8x8xf32> to vector<8x1x8xf32>
    %cst_34 = arith.constant 8.000000e+00 : f32
    %83 = vector.broadcast %cst_34 : f32 to vector<8x1x8xf32>
    %84 = arith.divf %82, %83 : vector<8x1x8xf32>
    %85 = vector.broadcast %84 : vector<8x1x8xf32> to vector<8x8x8xf32>
    %86 = arith.subf %80, %85 : vector<8x8x8xf32>
    %87 = arith.mulf %86, %86 : vector<8x8x8xf32>
    %cst_35 = arith.constant dense<0.000000e+00> : vector<8x8xf32>
    %88 = vector.multi_reduction <add>, %87, %cst_35 [1] : vector<8x8x8xf32> to vector<8x8xf32>
    %89 = vector.shape_cast %88 : vector<8x8xf32> to vector<8x1x8xf32>
    %cst_36 = arith.constant 8.000000e+00 : f32
    %90 = vector.broadcast %cst_36 : f32 to vector<8x1x8xf32>
    %91 = arith.divf %89, %90 : vector<8x1x8xf32>
    %92 = vector.broadcast %84 : vector<8x1x8xf32> to vector<8x8x8xf32>
    %93 = arith.subf %80, %92 : vector<8x8x8xf32>
    %cst_37 = arith.constant 9.99999974E-6 : f32
    %94 = vector.broadcast %cst_37 : f32 to vector<8x1x8xf32>
    %95 = arith.addf %91, %94 : vector<8x1x8xf32>
    %96 = math.rsqrt %95 : vector<8x1x8xf32>
    %97 = vector.broadcast %96 : vector<8x1x8xf32> to vector<8x8x8xf32>
    %98 = arith.mulf %93, %97 : vector<8x8x8xf32>
    %99 = vector.shape_cast %98 : vector<8x8x8xf32> to vector<64x8xf32>
    %c0_38 = arith.constant 0 : index
    %c0_39 = arith.constant 0 : index
    %100 = vector.load %arg4[%c0_38, %c0_39] : memref<8x16xf32, #tpu.memory_space<vmem>>, vector<8x16xf32>
    %cst_40 = arith.constant dense<0.000000e+00> : vector<64x16xf32>
    %101 = tpu.matmul %99, %100, %cst_40 {dimension_numbers = #tpu.dot_dimension_numbers<[1], [0], [0], [1], [0, 0, 1, 1], [], []>} : vector<64x8xf32>, vector<8x16xf32>, vector<64x16xf32> -> vector<64x16xf32>
    %c0_41 = arith.constant 0 : index
    %c0_42 = arith.constant 0 : index
    %102 = vector.load %arg9[%c0_41, %c0_42] : memref<1x16xf32, #tpu.memory_space<vmem>>, vector<1x16xf32>
    %103 = vector.broadcast %102 : vector<1x16xf32> to vector<64x16xf32>
    %104 = arith.addf %101, %103 : vector<64x16xf32>
    %105 = vector.extract_strided_slice %104 {offsets = [0, 0], sizes = [64, 8], strides = [1, 1]} : vector<64x16xf32> to vector<64x8xf32>
    %cst_43 = arith.constant 5.000000e-01 : f32
    %106 = vector.broadcast %cst_43 : f32 to vector<64x8xf32>
    %107 = arith.mulf %106, %105 : vector<64x8xf32>
    %cst_44 = arith.constant 0.707106769 : f32
    %108 = vector.broadcast %cst_44 : f32 to vector<64x8xf32>
    %109 = arith.mulf %105, %108 : vector<64x8xf32>
    %cst_45 = arith.constant 0.000000e+00 : f32
    %110 = vector.broadcast %cst_45 : f32 to vector<64x8xf32>
    %111 = arith.cmpf oge, %109, %110 : vector<64x8xf32>
    %cst_46 = arith.constant 1.000000e+00 : f32
    %cst_47 = arith.constant -1.000000e+00 : f32
    %112 = vector.broadcast %cst_46 : f32 to vector<64x8xf32>
    %113 = vector.broadcast %cst_47 : f32 to vector<64x8xf32>
    %114 = arith.select %111, %112, %113 : vector<64x8xi1>, vector<64x8xf32>
    %115 = math.absf %109 : vector<64x8xf32>
    %cst_48 = arith.constant 0.327591091 : f32
    %116 = vector.broadcast %cst_48 : f32 to vector<64x8xf32>
    %117 = arith.mulf %116, %115 : vector<64x8xf32>
    %cst_49 = arith.constant 1.000000e+00 : f32
    %118 = vector.broadcast %cst_49 : f32 to vector<64x8xf32>
    %119 = arith.addf %118, %117 : vector<64x8xf32>
    %120 = tpu.reciprocal %119 {approx = true} : vector<64x8xf32> -> vector<64x8xf32>
    %cst_50 = arith.constant 1.06140542 : f32
    %121 = vector.broadcast %cst_50 : f32 to vector<64x8xf32>
    %122 = arith.mulf %121, %120 : vector<64x8xf32>
    %cst_51 = arith.constant -1.45315206 : f32
    %123 = vector.broadcast %cst_51 : f32 to vector<64x8xf32>
    %124 = arith.addf %122, %123 : vector<64x8xf32>
    %125 = arith.mulf %124, %120 : vector<64x8xf32>
    %cst_52 = arith.constant 1.42141378 : f32
    %126 = vector.broadcast %cst_52 : f32 to vector<64x8xf32>
    %127 = arith.addf %125, %126 : vector<64x8xf32>
    %128 = arith.mulf %127, %120 : vector<64x8xf32>
    %cst_53 = arith.constant -0.284496725 : f32
    %129 = vector.broadcast %cst_53 : f32 to vector<64x8xf32>
    %130 = arith.addf %128, %129 : vector<64x8xf32>
    %131 = arith.mulf %130, %120 : vector<64x8xf32>
    %cst_54 = arith.constant 0.254829586 : f32
    %132 = vector.broadcast %cst_54 : f32 to vector<64x8xf32>
    %133 = arith.addf %131, %132 : vector<64x8xf32>
    %134 = arith.mulf %133, %120 : vector<64x8xf32>
    %cst_55 = arith.constant 0.000000e+00 : f32
    %135 = vector.broadcast %cst_55 : f32 to vector<64x8xf32>
    %136 = arith.subf %135, %115 : vector<64x8xf32>
    %137 = arith.mulf %136, %115 : vector<64x8xf32>
    %138 = math.exp %137 : vector<64x8xf32>
    %139 = arith.mulf %134, %138 : vector<64x8xf32>
    %cst_56 = arith.constant 1.000000e+00 : f32
    %140 = vector.broadcast %cst_56 : f32 to vector<64x8xf32>
    %141 = arith.subf %140, %139 : vector<64x8xf32>
    %142 = arith.mulf %114, %141 : vector<64x8xf32>
    %cst_57 = arith.constant 1.000000e+00 : f32
    %143 = vector.broadcast %cst_57 : f32 to vector<64x8xf32>
    %144 = arith.addf %143, %142 : vector<64x8xf32>
    %145 = arith.mulf %107, %144 : vector<64x8xf32>
    %146 = vector.extract_strided_slice %104 {offsets = [0, 8], sizes = [64, 8], strides = [1, 1]} : vector<64x16xf32> to vector<64x8xf32>
    %cst_58 = arith.constant 2.000000e+01 : f32
    %147 = vector.broadcast %cst_58 : f32 to vector<64x8xf32>
    %148 = arith.minimumf %146, %147 : vector<64x8xf32>
    %cst_59 = arith.constant 2.000000e+01 : f32
    %149 = vector.broadcast %cst_59 : f32 to vector<64x8xf32>
    %150 = arith.cmpf ogt, %146, %149 : vector<64x8xf32>
    %151 = math.exp %148 : vector<64x8xf32>
    %cst_60 = arith.constant 1.000000e+00 : f32
    %152 = vector.broadcast %cst_60 : f32 to vector<64x8xf32>
    %153 = arith.addf %152, %151 : vector<64x8xf32>
    %154 = math.log %153 : vector<64x8xf32>
    %155 = arith.select %150, %146, %154 : vector<64x8xi1>, vector<64x8xf32>
    %c0_61 = arith.constant 0 : index
    %c0_62 = arith.constant 0 : index
    %156 = vector.load %arg5[%c0_61, %c0_62] : memref<8x8xf32, #tpu.memory_space<vmem>>, vector<8x8xf32>
    %cst_63 = arith.constant dense<0.000000e+00> : vector<64x8xf32>
    %157 = tpu.matmul %145, %156, %cst_63 {dimension_numbers = #tpu.dot_dimension_numbers<[1], [0], [0], [1], [0, 0, 1, 1], [], []>} : vector<64x8xf32>, vector<8x8xf32>, vector<64x8xf32> -> vector<64x8xf32>
    %c0_64 = arith.constant 0 : index
    %c0_65 = arith.constant 0 : index
    %158 = vector.load %arg10[%c0_64, %c0_65] : memref<1x8xf32, #tpu.memory_space<vmem>>, vector<1x8xf32>
    %159 = vector.broadcast %158 : vector<1x8xf32> to vector<64x8xf32>
    %160 = arith.addf %157, %159 : vector<64x8xf32>
    %cst_66 = arith.constant 2.000000e+01 : f32
    %161 = vector.broadcast %cst_66 : f32 to vector<64x8xf32>
    %162 = arith.minimumf %160, %161 : vector<64x8xf32>
    %cst_67 = arith.constant 2.000000e+01 : f32
    %163 = vector.broadcast %cst_67 : f32 to vector<64x8xf32>
    %164 = arith.cmpf ogt, %160, %163 : vector<64x8xf32>
    %165 = math.exp %162 : vector<64x8xf32>
    %cst_68 = arith.constant 1.000000e+00 : f32
    %166 = vector.broadcast %cst_68 : f32 to vector<64x8xf32>
    %167 = arith.addf %166, %165 : vector<64x8xf32>
    %168 = math.log %167 : vector<64x8xf32>
    %169 = arith.select %164, %160, %168 : vector<64x8xi1>, vector<64x8xf32>
    %170 = arith.subf %155, %169 : vector<64x8xf32>
    %171 = vector.shape_cast %170 : vector<64x8xf32> to vector<8x8x8xf32>
    %cst_69 = arith.constant dense<0.000000e+00> : vector<8x8xf32>
    %172 = vector.multi_reduction <add>, %171, %cst_69 [1] : vector<8x8x8xf32> to vector<8x8xf32>
    %173 = vector.shape_cast %172 : vector<8x8xf32> to vector<8x1x8xf32>
    %cst_70 = arith.constant 8.000000e+00 : f32
    %174 = vector.broadcast %cst_70 : f32 to vector<8x1x8xf32>
    %175 = arith.divf %173, %174 : vector<8x1x8xf32>
    %176 = vector.broadcast %175 : vector<8x1x8xf32> to vector<8x8x8xf32>
    %177 = arith.subf %171, %176 : vector<8x8x8xf32>
    %178 = arith.mulf %177, %177 : vector<8x8x8xf32>
    %cst_71 = arith.constant dense<0.000000e+00> : vector<8x8xf32>
    %179 = vector.multi_reduction <add>, %178, %cst_71 [1] : vector<8x8x8xf32> to vector<8x8xf32>
    %180 = vector.shape_cast %179 : vector<8x8xf32> to vector<8x1x8xf32>
    %cst_72 = arith.constant 8.000000e+00 : f32
    %181 = vector.broadcast %cst_72 : f32 to vector<8x1x8xf32>
    %182 = arith.divf %180, %181 : vector<8x1x8xf32>
    %183 = vector.broadcast %175 : vector<8x1x8xf32> to vector<8x8x8xf32>
    %184 = arith.subf %171, %183 : vector<8x8x8xf32>
    %cst_73 = arith.constant 9.99999974E-6 : f32
    %185 = vector.broadcast %cst_73 : f32 to vector<8x1x8xf32>
    %186 = arith.addf %182, %185 : vector<8x1x8xf32>
    %187 = math.rsqrt %186 : vector<8x1x8xf32>
    %188 = vector.broadcast %187 : vector<8x1x8xf32> to vector<8x8x8xf32>
    %189 = arith.mulf %184, %188 : vector<8x8x8xf32>
    %190 = vector.shape_cast %189 : vector<8x8x8xf32> to vector<64x8xf32>
    %c0_74 = arith.constant 0 : index
    %c0_75 = arith.constant 0 : index
    %191 = vector.load %arg6[%c0_74, %c0_75] : memref<8x8xf32, #tpu.memory_space<vmem>>, vector<8x8xf32>
    %cst_76 = arith.constant dense<0.000000e+00> : vector<64x8xf32>
    %192 = tpu.matmul %190, %191, %cst_76 {dimension_numbers = #tpu.dot_dimension_numbers<[1], [0], [0], [1], [0, 0, 1, 1], [], []>} : vector<64x8xf32>, vector<8x8xf32>, vector<64x8xf32> -> vector<64x8xf32>
    %c0_77 = arith.constant 0 : index
    %c0_78 = arith.constant 0 : index
    %193 = vector.load %arg11[%c0_77, %c0_78] : memref<1x8xf32, #tpu.memory_space<vmem>>, vector<1x8xf32>
    %194 = vector.broadcast %193 : vector<1x8xf32> to vector<64x8xf32>
    %195 = arith.addf %192, %194 : vector<64x8xf32>
    %cst_79 = arith.constant 2.000000e+01 : f32
    %196 = vector.broadcast %cst_79 : f32 to vector<64x8xf32>
    %197 = arith.minimumf %195, %196 : vector<64x8xf32>
    %cst_80 = arith.constant 2.000000e+01 : f32
    %198 = vector.broadcast %cst_80 : f32 to vector<64x8xf32>
    %199 = arith.cmpf ogt, %195, %198 : vector<64x8xf32>
    %200 = math.exp %197 : vector<64x8xf32>
    %cst_81 = arith.constant 1.000000e+00 : f32
    %201 = vector.broadcast %cst_81 : f32 to vector<64x8xf32>
    %202 = arith.addf %201, %200 : vector<64x8xf32>
    %203 = math.log %202 : vector<64x8xf32>
    %204 = arith.select %199, %195, %203 : vector<64x8xi1>, vector<64x8xf32>
    %c0_82 = arith.constant 0 : index
    %c0_83 = arith.constant 0 : index
    %c0_84 = arith.constant 0 : index
    %205 = vector.load %arg12[%c0_82, %c0_83, %c0_84] : memref<3x8x128xf32, #tpu.memory_space<vmem>>, vector<1x8x128xf32>
    %206 = vector.shape_cast %205 : vector<1x8x128xf32> to vector<8x128xf32>
    %cst_85 = arith.constant dense<0.000000e+00> : vector<64x128xf32>
    %207 = tpu.matmul %169, %206, %cst_85 {dimension_numbers = #tpu.dot_dimension_numbers<[1], [0], [0], [1], [0, 0, 1, 1], [], []>} : vector<64x8xf32>, vector<8x128xf32>, vector<64x128xf32> -> vector<64x128xf32>
    %c1 = arith.constant 1 : index
    %c0_86 = arith.constant 0 : index
    %c0_87 = arith.constant 0 : index
    %208 = vector.load %arg12[%c1, %c0_86, %c0_87] : memref<3x8x128xf32, #tpu.memory_space<vmem>>, vector<1x8x128xf32>
    %209 = vector.shape_cast %208 : vector<1x8x128xf32> to vector<8x128xf32>
    %cst_88 = arith.constant dense<0.000000e+00> : vector<64x128xf32>
    %210 = tpu.matmul %204, %209, %cst_88 {dimension_numbers = #tpu.dot_dimension_numbers<[1], [0], [0], [1], [0, 0, 1, 1], [], []>} : vector<64x8xf32>, vector<8x128xf32>, vector<64x128xf32> -> vector<64x128xf32>
    %c2 = arith.constant 2 : index
    %c0_89 = arith.constant 0 : index
    %c0_90 = arith.constant 0 : index
    %211 = vector.load %arg12[%c2, %c0_89, %c0_90] : memref<3x8x128xf32, #tpu.memory_space<vmem>>, vector<1x8x128xf32>
    %212 = vector.shape_cast %211 : vector<1x8x128xf32> to vector<8x128xf32>
    %cst_91 = arith.constant dense<0.000000e+00> : vector<64x128xf32>
    %213 = tpu.matmul %204, %212, %cst_91 {dimension_numbers = #tpu.dot_dimension_numbers<[1], [0], [0], [1], [0, 0, 1, 1], [], []>} : vector<64x8xf32>, vector<8x128xf32>, vector<64x128xf32> -> vector<64x128xf32>
    %214 = arith.mulf %210, %213 : vector<64x128xf32>
    %215 = arith.addf %207, %214 : vector<64x128xf32>
    %c0_92 = arith.constant 0 : index
    %c0_93 = arith.constant 0 : index
    %216 = vector.load %arg13[%c0_92, %c0_93] : memref<64x128xf32, #tpu.memory_space<vmem>>, vector<64x128xf32>
    tpu.vector_store %arg13[%c0_92, %c0_93], %215 {strides = array<i32>} : memref<64x128xf32, #tpu.memory_space<vmem>>, vector<64x128xf32>,
    return
  }
  func.func @transform_0(%arg0: i32) -> (i32, i32) {
    %c0_i32 = arith.constant 0 : i32
    %c0_i32_0 = arith.constant 0 : i32
    return %arg0, %c0_i32 : i32, i32
  }
  func.func @transform_1(%arg0: i32) -> (i32, i32) {
    %c0_i32 = arith.constant 0 : i32
    %c0_i32_0 = arith.constant 0 : i32
    %c0_i32_1 = arith.constant 0 : i32
    return %c0_i32, %c0_i32_0 : i32, i32
  }
  func.func @transform_2(%arg0: i32) -> (i32, i32) {
    %c0_i32 = arith.constant 0 : i32
    %c0_i32_0 = arith.constant 0 : i32
    %c0_i32_1 = arith.constant 0 : i32
    return %c0_i32, %c0_i32_0 : i32, i32
  }
  func.func @transform_3(%arg0: i32) -> (i32, i32) {
    %c0_i32 = arith.constant 0 : i32
    %c0_i32_0 = arith.constant 0 : i32
    %c0_i32_1 = arith.constant 0 : i32
    return %c0_i32, %c0_i32_0 : i32, i32
  }
  func.func @transform_4(%arg0: i32) -> (i32, i32) {
    %c0_i32 = arith.constant 0 : i32
    %c0_i32_0 = arith.constant 0 : i32
    %c0_i32_1 = arith.constant 0 : i32
    return %c0_i32, %c0_i32_0 : i32, i32
  }
  func.func @transform_5(%arg0: i32) -> (i32, i32) {
    %c0_i32 = arith.constant 0 : i32
    %c0_i32_0 = arith.constant 0 : i32
    %c0_i32_1 = arith.constant 0 : i32
    return %c0_i32, %c0_i32_0 : i32, i32
  }
  func.func @transform_6(%arg0: i32) -> (i32, i32) {
    %c0_i32 = arith.constant 0 : i32
    %c0_i32_0 = arith.constant 0 : i32
    %c0_i32_1 = arith.constant 0 : i32
    return %c0_i32, %c0_i32_0 : i32, i32
  }
  func.func @transform_7(%arg0: i32) -> (i32, i32) {
    %c0_i32 = arith.constant 0 : i32
    %c0_i32_0 = arith.constant 0 : i32
    %c0_i32_1 = arith.constant 0 : i32
    return %c0_i32, %c0_i32_0 : i32, i32
  }
  func.func @transform_8(%arg0: i32) -> (i32, i32) {
    %c0_i32 = arith.constant 0 : i32
    %c0_i32_0 = arith.constant 0 : i32
    %c0_i32_1 = arith.constant 0 : i32
    return %c0_i32, %c0_i32_0 : i32, i32
  }
  func.func @transform_9(%arg0: i32) -> (i32, i32) {
    %c0_i32 = arith.constant 0 : i32
    %c0_i32_0 = arith.constant 0 : i32
    %c0_i32_1 = arith.constant 0 : i32
    return %c0_i32, %c0_i32_0 : i32, i32
  }
  func.func @transform_10(%arg0: i32) -> (i32, i32) {
    %c0_i32 = arith.constant 0 : i32
    %c0_i32_0 = arith.constant 0 : i32
    %c0_i32_1 = arith.constant 0 : i32
    return %c0_i32, %c0_i32_0 : i32, i32
  }
  func.func @transform_11(%arg0: i32) -> (i32, i32, i32) {
    %c0_i32 = arith.constant 0 : i32
    %c0_i32_0 = arith.constant 0 : i32
    %c0_i32_1 = arith.constant 0 : i32
    %c0_i32_2 = arith.constant 0 : i32
    return %c0_i32, %c0_i32_0, %c0_i32_1 : i32, i32, i32
  }
  func.func @transform_12(%arg0: i32) -> (i32, i32) {
    %c0_i32 = arith.constant 0 : i32
    %c0_i32_0 = arith.constant 0 : i32
    return %arg0, %c0_i32 : i32, i32
  }
}

</mosaic_0001>

<bundles_post_ra>
// kernel: _forward_impl.1
= control target key start
LH: loop header
LB: loop body
LE: loop exit
PB: predicated region body
PF: predicated region fallthrough
CT: control target
= control target key end

     0   :  { %vm49_vm0 = vcmask 130048   ;;  %vm576_vm6 = vcmask 261120   ;;  %vm770_vm10 = vcmask 64512   ;;  %s3831_s1 = inlined_call_operand.vmem [shape: f32[16,32], index: 1, kind: input, shape index: {}]   ;;  %s3832_s0 = inlined_call_operand.vmem [shape: f32[64,16], index: 0, kind: input, shape index: {}]   ;;  %s3833_s2 = inlined_call_operand.vmem [shape: f32[32,8], index: 2, kind: input, shape index: {}]   ;;  %s3834_s6 = inlined_call_operand.vmem [shape: f32[1,32], index: 6, kind: input, shape index: {}]   ;;  %s3835_s3 = inlined_call_operand.vmem [shape: f32[8,16], index: 3, kind: input, shape index: {}]   ;;  %s3836_s7 = inlined_call_operand.vmem [shape: f32[1,8], index: 7, kind: input, shape index: {}]   ;;  %s3837_s4 = inlined_call_operand.vmem [shape: f32[8,8], index: 4, kind: input, shape index: {}]   ;;  %s3838_s8 = inlined_call_operand.vmem [shape: f32[1,16], index: 8, kind: input, shape index: {}]   ;;  %s3839_s9 = inlined_call_operand.vmem [shape: f32[1,8], index: 9, kind: input, shape index: {}]   ;;  %s3840_s5 = inlined_call_operand.vmem [shape: f32[8,8], index: 5, kind: input, shape index: {}]   ;;  %s3841_s11 = inlined_call_operand.vmem [shape: f32[3,8,128], index: 11, kind: input, shape index: {}]   ;;  %s3842_s10 = inlined_call_operand.vmem [shape: f32[1,8], index: 10, kind: input, shape index: {}]   ;;  %s3843_s12 = inlined_call_operand.vmem [shape: f32[64,128], index: 12, kind: output, shape index: {}]  }
   0x1   :  { %v219_v0 = vld [vmem:[%s3831_s1] sm:$0xff]  ;;  %v220_v1 = vld [vmem:[%s3831_s1 + $0x8] sm:$0xff]  ;;  %v2966_v6 = vld [vmem:[%s3832_s0 + $0x10] sm:$0xff] }
   0x2   :  { %v2954_v2 = vld [vmem:[%s3832_s0] sm:$0xff]  ;;  %v2622_v3 = vpack.c.bf16 %v220_v1, %v219_v0  ;;  %v2961_v5 = vld [vmem:[%s3832_s0 + $0x8] sm:$0xff]  ;;  %v2971_v7 = vld [vmem:[%s3832_s0 + $0x18] sm:$0xff]  ;;  %v64_v10 = vsel %vm49_vm0, %v2966_v6, 0.0 }
   0x3   :  { %v50_v4 = vsel %vm49_vm0, %v2954_v2, 0.0  ;;  %v57_v9 = vsel %vm49_vm0, %v2961_v5, 0.0  ;;  %v71_v11 = vsel %vm49_vm0, %v2971_v7, 0.0  ;;  %v2982_v12 = vld [vmem:[%s3832_s0 + $0x20] sm:$0xff]  ;;  %v2987_v13 = vld [vmem:[%s3832_s0 + $0x28] sm:$0xff]  ;;  %v65_v15 = vrot.slane %v64_v10, 4 }
   0x4   :  { %v51_v8 = vrot.slane %v50_v4, 4  ;;  %2623 = vmatprep.subr.bf16.mxu0 %v2622_v3  ;;  %v58_v14 = vrot.slane %v57_v9, 4  ;;  %v72_v16 = vrot.slane %v71_v11, 4  ;;  %v78_v17 = vsel %vm49_vm0, %v2982_v12, 0.0  ;;  %v2994_v18 = vld [vmem:[%s3832_s0 + $0x30] sm:$0xff]  ;;  %v2999_v19 = vld [vmem:[%s3832_s0 + $0x38] sm:$0xff] }
   0x5   :  { %2625 = vmatpush3.bf16.msra.mxu0 %v2622_v3  ;;  %v79_v21 = vrot.slane %v78_v17, 4  ;;  %v85_v22 = vsel %vm49_vm0, %v2987_v13, 0.0  ;;  %v92_v23 = vsel %vm49_vm0, %v2994_v18, 0.0  ;;  %v66_v25 = vadd.f32 %v65_v15, %v64_v10 }
   0x6   :  { %v52_v20 = vadd.f32 %v51_v8, %v50_v4  ;;  %v59_v24 = vadd.f32 %v58_v14, %v57_v9  ;;  %v73_v26 = vadd.f32 %v72_v16, %v71_v11  ;;  %v86_v27 = vrot.slane %v85_v22, 4 }
   0x7   :  { %v80_v29 = vadd.f32 %v79_v21, %v78_v17  ;;  %v93_v30 = vrot.slane %v92_v23, 4  ;;  %v99_v31 = vsel %vm49_vm0, %v2999_v19, 0.0  ;;  %v67_v33 = vrot.slane %v66_v25, 2 }
   0x8   :  { %v53_v28 = vrot.slane %v52_v20, 2  ;;  %v60_v32 = vrot.slane %v59_v24, 2  ;;  %v74_v34 = vrot.slane %v73_v26, 2  ;;  %v87_v35 = vadd.f32 %v86_v27, %v85_v22 }
   0x9   :  { %v81_v37 = vrot.slane %v80_v29, 2  ;;  %v94_v38 = vadd.f32 %v93_v30, %v92_v23  ;;  %v100_v39 = vrot.slane %v99_v31, 4  ;;  %v68_v41 = vadd.f32 %v67_v33, %v66_v25 }
   0xa   :  { %v54_v36 = vadd.f32 %v53_v28, %v52_v20  ;;  %v61_v40 = vadd.f32 %v60_v32, %v59_v24  ;;  %v75_v42 = vadd.f32 %v74_v34, %v73_v26  ;;  %v88_v43 = vrot.slane %v87_v35, 2 }
   0xb   :  { %v82_v45 = vadd.f32 %v81_v37, %v80_v29  ;;  %v95_v46 = vrot.slane %v94_v38, 2  ;;  %v101_v47 = vadd.f32 %v100_v39, %v99_v31  ;;  %v69_v49 = vrot.slane %v68_v41, 1 }
   0xc   :  { %v55_v44 = vrot.slane %v54_v36, 1  ;;  %v62_v48 = vrot.slane %v61_v40, 1  ;;  %v76_v50 = vrot.slane %v75_v42, 1  ;;  %v89_v51 = vadd.f32 %v88_v43, %v87_v35 }
   0xd   :  { %v83_v53 = vrot.slane %v82_v45, 1  ;;  %v96_v54 = vadd.f32 %v95_v46, %v94_v38  ;;  %v102_v55 = vrot.slane %v101_v47, 2  ;;  %v70_v57 = vadd.f32 %v69_v49, %v68_v41 }
   0xe   :  { %v56_v52 = vadd.f32 %v55_v44, %v54_v36  ;;  %v63_v56 = vadd.f32 %v62_v48, %v61_v40  ;;  %v77_v58 = vadd.f32 %v76_v50, %v75_v42  ;;  %v90_v59 = vrot.slane %v89_v51, 1 }
   0xf   :  { %v84_v61 = vadd.f32 %v83_v53, %v82_v45  ;;  %v97_v62 = vrot.slane %v96_v54, 1  ;;  %v103_v63 = vadd.f32 %v102_v55, %v101_v47  ;;  %v109_v1 = vmul.f32 0.125, %v70_v57 }
  0x10   :  { %v107_v60 = vmul.f32 0.125, %v56_v52  ;;  %v108_v0 = vmul.f32 0.125, %v63_v56  ;;  %v110_v3 = vmul.f32 0.125, %v77_v58  ;;  %v91_v4 = vadd.f32 %v90_v59, %v89_v51 }
  0x11   :  { %v111_v9 = vmul.f32 0.125, %v84_v61  ;;  %v98_v10 = vadd.f32 %v97_v62, %v96_v54  ;;  %v104_v11 = vrot.slane %v103_v63, 1  ;;  %v3014_v15 = vsub.f32 %v2966_v6, %v109_v1 }
  0x12   :  { %v3008_v8 = vsub.f32 %v2954_v2, %v107_v60  ;;  %v3011_v14 = vsub.f32 %v2961_v5, %v108_v0  ;;  %v3017_v16 = vsub.f32 %v2971_v7, %v110_v3  ;;  %v112_v17 = vmul.f32 0.125, %v91_v4 }
  0x13   :  { %v3022_v21 = vsub.f32 %v2982_v12, %v111_v9  ;;  %v113_v2 = vmul.f32 0.125, %v98_v10  ;;  %v105_v22 = vadd.f32 %v104_v11, %v103_v63  ;;  %v125_v5 = vmul.f32 %v3014_v15, %v3014_v15 }
  0x14   :  { %v123_v20 = vmul.f32 %v3008_v8, %v3008_v8  ;;  %v124_v23 = vmul.f32 %v3011_v14, %v3011_v14  ;;  %v126_v6 = vmul.f32 %v3017_v16, %v3017_v16  ;;  %v3031_v7 = vsub.f32 %v2987_v13, %v112_v17 }
  0x15   :  { %v127_v12 = vmul.f32 %v3022_v21, %v3022_v21  ;;  %v3037_v25 = vsub.f32 %v2994_v18, %v113_v2  ;;  %v114_v26 = vmul.f32 0.125, %v105_v22  ;;  %v145_v29 = vsel %vm49_vm0, %v125_v5, 0.0 }
  0x16   :  { %v131_v24 = vsel %vm49_vm0, %v123_v20, 0.0  ;;  %v138_v28 = vsel %vm49_vm0, %v124_v23, 0.0  ;;  %v152_v30 = vsel %vm49_vm0, %v126_v6, 0.0  ;;  %v146_v32 = vrot.slane %v145_v29, 4 }
  0x17   :  { %v132_v27 = vrot.slane %v131_v24, 4  ;;  %v139_v31 = vrot.slane %v138_v28, 4  ;;  %v153_v13 = vrot.slane %v152_v30, 4  ;;  %v159_v33 = vsel %vm49_vm0, %v127_v12, 0.0 }
  0x18   :  { %v160_v35 = vrot.slane %v159_v33, 4  ;;  %v128_v36 = vmul.f32 %v3031_v7, %v3031_v7  ;;  %v129_v18 = vmul.f32 %v3037_v25, %v3037_v25  ;;  %v147_v38 = vadd.f32 %v146_v32, %v145_v29 }
  0x19   :  { %v133_v34 = vadd.f32 %v132_v27, %v131_v24  ;;  %v140_v37 = vadd.f32 %v139_v31, %v138_v28  ;;  %v154_v39 = vadd.f32 %v153_v13, %v152_v30  ;;  %v3048_v40 = vsub.f32 %v2999_v19, %v114_v26 }
  0x1a   :  { %v161_v42 = vadd.f32 %v160_v35, %v159_v33  ;;  %v166_v43 = vsel %vm49_vm0, %v128_v36, 0.0  ;;  %v173_v44 = vsel %vm49_vm0, %v129_v18, 0.0  ;;  %v148_v46 = vrot.slane %v147_v38, 2 }
  0x1b   :  { %v134_v41 = vrot.slane %v133_v34, 2  ;;  %v141_v45 = vrot.slane %v140_v37, 2  ;;  %v155_v47 = vrot.slane %v154_v39, 2  ;;  %v167_v48 = vrot.slane %v166_v43, 4 }
  0x1c   :  { %v162_v50 = vrot.slane %v161_v42, 2  ;;  %v174_v51 = vrot.slane %v173_v44, 4  ;;  %v130_v52 = vmul.f32 %v3048_v40, %v3048_v40  ;;  %v149_v54 = vadd.f32 %v148_v46, %v147_v38 }
  0x1d   :  { %v135_v49 = vadd.f32 %v134_v41, %v133_v34  ;;  %v142_v53 = vadd.f32 %v141_v45, %v140_v37  ;;  %v156_v19 = vadd.f32 %v155_v47, %v154_v39  ;;  %v168_v55 = vadd.f32 %v167_v48, %v166_v43 }
  0x1e   :  { %v163_v57 = vadd.f32 %v162_v50, %v161_v42  ;;  %v175_v58 = vadd.f32 %v174_v51, %v173_v44  ;;  %v180_v59 = vsel %vm49_vm0, %v130_v52, 0.0  ;;  %v150_v61 = vrot.slane %v149_v54, 1 }
  0x1f   :  { %v136_v56 = vrot.slane %v135_v49, 1  ;;  %v143_v60 = vrot.slane %v142_v53, 1  ;;  %v157_v62 = vrot.slane %v156_v19, 1  ;;  %v169_v63 = vrot.slane %v168_v55, 2 }
  0x20   :  { %v164_v1 = vrot.slane %v163_v57, 1  ;;  %v176_v3 = vrot.slane %v175_v58, 2  ;;  %v181_v4 = vrot.slane %v180_v59, 4  ;;  %v151_v10 = vadd.f32 %v150_v61, %v149_v54 }
  0x21   :  { %v137_v0 = vadd.f32 %v136_v56, %v135_v49  ;;  %v144_v9 = vadd.f32 %v143_v60, %v142_v53  ;;  %v158_v11 = vadd.f32 %v157_v62, %v156_v19  ;;  %v170_v17 = vadd.f32 %v169_v63, %v168_v55 }
  0x22   :  { %v165_v2 = vadd.f32 %v164_v1, %v163_v57  ;;  %v177_v22 = vadd.f32 %v176_v3, %v175_v58  ;;  %v182_v23 = vadd.f32 %v181_v4, %v180_v59  ;;  %v189_v6 = vmul.f32 0.125, %v151_v10  ;;  %v2355_v57 = vld [vmem:[%s3834_s6] ss:$0 sm:$0xff] }
  0x23   :  { %v187_v20 = vmul.f32 0.125, %v137_v0  ;;  %v188_v5 = vmul.f32 0.125, %v144_v9  ;;  %v190_v24 = vmul.f32 0.125, %v158_v11  ;;  %v171_v12 = vrot.slane %v170_v17, 1 }
  0x24   :  { %v191_v27 = vmul.f32 0.125, %v165_v2  ;;  %v178_v28 = vrot.slane %v177_v22, 1  ;;  %v183_v29 = vrot.slane %v182_v23, 2  ;;  %v197_v31 = vadd.f32 1e-05, %v189_v6 }
  0x25   :  { %v195_v26 = vadd.f32 1e-05, %v187_v20  ;;  %v196_v30 = vadd.f32 1e-05, %v188_v5  ;;  %v198_v32 = vadd.f32 1e-05, %v190_v24  ;;  %v172_v13 = vadd.f32 %v171_v12, %v170_v17 }
  0x26   :  { %v199_v33 = vadd.f32 1e-05, %v191_v27  ;;  %v179_v34 = vadd.f32 %v178_v28, %v177_v22  ;;  %v184_v35 = vadd.f32 %v183_v29, %v182_v23 }
  0x27   :  { %2637 = vrsqrt.f32 %v195_v26  ;;  %v192_v36 = vmul.f32 0.125, %v172_v13 }
  0x28   :  { %2639 = vrsqrt.f32 %v196_v30  ;;  %v193_v18 = vmul.f32 0.125, %v179_v34  ;;  %v185_v37 = vrot.slane %v184_v35, 1 }
  0x29   :  { %2641 = vrsqrt.f32 %v197_v31  ;;  %v200_v38 = vadd.f32 1e-05, %v192_v36 }
  0x2a   :  { %2643 = vrsqrt.f32 %v198_v32  ;;  %v201_v39 = vadd.f32 1e-05, %v193_v18  ;;  %v186_v41 = vadd.f32 %v185_v37, %v184_v35 }
  0x2b   :  { %2645 = vrsqrt.f32 %v199_v33 }
  0x2c   :  { %2647 = vrsqrt.f32 %v200_v38  ;;  %v194_v42 = vmul.f32 0.125, %v186_v41 }
  0x2d   :  { %2649 = vrsqrt.f32 %v201_v39 }
  0x2e   :  { %v202_v43 = vadd.f32 1e-05, %v194_v42 }
  0x30   :  { %2651 = vrsqrt.f32 %v202_v43 }
  0x31   :  { %v2638_v44 = vpop.eup %2637 }
  0x32   :  { %v2640_v45 = vpop.eup %2639  ;;  %v211_v46 = vmul.f32 %v2638_v44, %v3008_v8 }
  0x33   :  { %v2642_v47 = vpop.eup %2641  ;;  %v212_v48 = vmul.f32 %v2640_v45, %v3011_v14 }
  0x34   :  { %v2644_v49 = vpop.eup %2643  ;;  %2506 = vmatprep.mubr.msk.f32.mxu0 %vm49_vm0, %v211_v46  ;;  %v213_v50 = vmul.f32 %v2642_v47, %v3014_v15 }
  0x35   :  { %v2646_v51 = vpop.eup %2645  ;;  %2507 = vmatmul.mubr.msk.f32.vlgmr.msra.gmra.mrb[0].mxu0 %vm49_vm0, %v212_v48  ;;  %v214_v52 = vmul.f32 %v2644_v49, %v3017_v16  ;;  %v565_v16 = vld [vmem:[%s3833_s2] sm:$0xff] }
  0x36   :  { %v2648_v53 = vpop.eup %2647  ;;  %2509 = vmatprep.mubr.msk.f32.mxu0 %vm49_vm0, %v213_v50  ;;  %v215_v54 = vmul.f32 %v2646_v51, %v3022_v21  ;;  %v566_v21 = vld [vmem:[%s3833_s2 + $0x8] sm:$0xff] }
  0x37   :  { %v2650_v19 = vpop.eup %2649  ;;  %v216_v8 = vmul.f32 %v2648_v53, %v3031_v7  ;;  %v2626_v7 = vpack.c.bf16 %v566_v21, %v565_v16 }
  0x38   :  { %v217_v14 = vmul.f32 %v2650_v19, %v3037_v25  ;;  %v567_v25 = vld [vmem:[%s3833_s2 + $0x10] sm:$0xff] }
  0x39   :  { %2510 = vmatmul.mubr.msk.f32.gmra.mrb[2].mxu0 %vm49_vm0, %v214_v52  ;;  %2627 = vmatprep.subr.bf16.mxu1 %v2626_v7 }
  0x3a   :  { %2512 = vmatprep.mubr.msk.f32.mxu0 %vm49_vm0, %v215_v54  ;;  %v2652_v15 = vpop.eup %2651  ;;  %2629 = vmatpush3.bf16.msra.mxu1 %v2626_v7 }
  0x3b   :  { %v218_v55 = vmul.f32 %v2652_v15, %v3048_v40  ;;  %v568_v40 = vld [vmem:[%s3833_s2 + $0x18] sm:$0xff] }
  0x3c   :  { %v2630_v56 = vpack.c.bf16 %v568_v40, %v567_v25 }
  0x3d   :  { %2513 = vmatmul.mubr.msk.f32.gmra.mrb[4].mxu0 %vm49_vm0, %v216_v8  ;;  %v2877_v8 = vmov -1.0  }
  0x3e   :  { %2515 = vmatprep.mubr.msk.f32.mxu0 %vm49_vm0, %v217_v14  ;;  %2631 = vmatprep.subr.bf16.mxu1 %v2630_v56 }
  0x3f   :  { %2633 = vmatpush3.bf16.msra.mxu1 %v2630_v56 }
  0x41   :  { %2516 = vmatmul.mubr.msk.f32.gmra.mrb[6].mxu0 %vm49_vm0, %v218_v55 }
 0x108   :  { %v2508_v58 = vpop.f32.mrb[0].mxu0 }
 0x109   :  { %v324_v59 = vadd.f32 %v2508_v58, %v2355_v57  ;;  %v318_v60 = vpop.f32.mrb[1].mxu0 }
 0x10a   :  { %v319_v61 = vadd.f32 %v2355_v57, %v318_v60 }
 0x10b   :  { %v366_v62 = vmul.f32 0.70710677, %v324_v59  ;;  %v3114_v42 = vmul.f32 0.5, %v324_v59 }
 0x10c   :  { %v3086_v63 = vmul.f32 0.70710677, %v319_v61  ;;  %v2511_v0 = vpop.f32.mrb[2].mxu0  ;;  %v3125_v51 = vmul.f32 0.5, %v319_v61 }
 0x10d   :  { %v390_v1 = vand.u32 2147483647, %v366_v62  ;;  %v3088_v3 = vadd.f32 %v2511_v0, %v2355_v57  ;;  %v328_v4 = vpop.f32.mrb[3].mxu0  ;;  %vm374_vm1 = vcmp.ge.f32.partialorder %v366_v62, 0.0 }
 0x10e   :  { %v389_v9 = vand.u32 2147483647, %v3086_v63  ;;  %v3091_v10 = vadd.f32 %v2355_v57, %v328_v4  ;;  %v3130_v14 = vsel %vm374_vm1, 1.0, %v2877_v8  ;;  %vm373_vm4 = vcmp.ge.f32.partialorder %v3086_v63, 0.0 }
 0x10f   :  { %v398_v11 = vmul.f32 0.3275911, %v390_v1  ;;  %v368_v17 = vmul.f32 0.70710677, %v3088_v3  ;;  %v494_v13 = vsub.f32 0.0, %v390_v1 }
 0x110   :  { %v3095_v20 = vmul.f32 0.70710677, %v3091_v10  ;;  %v397_v22 = vmul.f32 0.3275911, %v389_v9  ;;  %v2514_v5 = vpop.f32.mrb[4].mxu0  ;;  %v493_v36 = vsub.f32 0.0, %v389_v9 }
 0x111   :  { %v406_v2 = vadd.f32 1.0, %v398_v11  ;;  %v392_v23 = vand.u32 2147483647, %v368_v17  ;;  %v338_v6 = vpop.f32.mrb[5].mxu0  ;;  %v3098_v29 = vadd.f32 %v2514_v5, %v2355_v57  ;;  %v502_v38 = vmul.f32 %v494_v13, %v390_v1 }
 0x112   :  { %v391_v12 = vand.u32 2147483647, %v3095_v20  ;;  %v405_v27 = vadd.f32 1.0, %v397_v22  ;;  %v3100_v32 = vadd.f32 %v2355_v57, %v338_v6  ;;  %v501_v46 = vmul.f32 %v493_v36, %v389_v9 }
 0x113   :  { %2653 = vrcp.f32 %v406_v2  ;;  %v400_v24 = vmul.f32 0.3275911, %v392_v23  ;;  %v3103_v33 = vmul.f32 0.70710677, %v3098_v29  ;;  %v496_v43 = vsub.f32 0.0, %v392_v23 }
 0x114   :  { %v2517_v26 = vpop.f32.mrb[6].mxu0  ;;  %v399_v31 = vmul.f32 0.3275911, %v391_v12  ;;  %v3106_v35 = vmul.f32 0.70710677, %v3100_v32  ;;  %vm376_vm2 = vcmp.ge.f32.partialorder %v368_v17, 0.0 }
 0x115   :  { %v408_v28 = vadd.f32 1.0, %v400_v24  ;;  %v348_v30 = vpop.f32.mrb[7].mxu0  ;;  %v394_v18 = vand.u32 2147483647, %v3103_v33  ;;  %v3109_v37 = vadd.f32 %v2517_v26, %v2355_v57  ;;  %v511_v53 = vmul.f32 1.442695, %v502_v38 }
 0x116   :  { %v407_v34 = vadd.f32 1.0, %v399_v31  ;;  %v3112_v41 = vand.u32 2147483647, %v3106_v35  ;;  %v3122_v49 = vadd.f32 %v2355_v57, %v348_v30  ;;  %v495_v54 = vsub.f32 0.0, %v391_v12 }
 0x117   :  { %2655 = vrcp.f32 %v408_v28  ;;  %v402_v39 = vmul.f32 0.3275911, %v394_v18  ;;  %v3117_v44 = vmul.f32 0.70710677, %v3109_v37  ;;  %v504_v55 = vmul.f32 %v496_v43, %v392_v23 }
 0x118   :  { %2657 = vrcp.f32 %v405_v27  ;;  %v401_v48 = vmul.f32 0.3275911, %v3112_v41  ;;  %v509_v7 = vmul.f32 1.442695, %v501_v46  ;;  %v3135_v25 = vsel %vm376_vm2, 1.0, %v2877_v8 }
 0x119   :  { %2659 = vrcp.f32 %v407_v34  ;;  %v410_v47 = vadd.f32 1.0, %v402_v39  ;;  %v396_v52 = vand.u32 2147483647, %v3117_v44  ;;  %v498_v40 = vsub.f32 0.0, %v394_v18 }
 0x11a   :  { %v409_v19 = vadd.f32 1.0, %v401_v48  ;;  %v3138_v56 = vmul.f32 0.70710677, %v3122_v49  ;;  %vm375_vm3 = vcmp.ge.f32.partialorder %v3095_v20, 0.0  ;;  %v503_v61 = vmul.f32 %v495_v54, %v391_v12 }
 0x11b   :  { %2661 = vrcp.f32 %v410_v47  ;;  %v404_v16 = vmul.f32 0.3275911, %v396_v52  ;;  %v515_v9 = vmul.f32 1.442695, %v504_v55  ;;  %v506_v17 = vmul.f32 %v498_v40, %v394_v18 }
 0x11c   :  { %2663 = vrcp.f32 %v409_v19  ;;  %v395_v62 = vand.u32 2147483647, %v3138_v56  ;;  %v497_v5 = vsub.f32 0.0, %v3112_v41  ;;  %v513_v12 = vmul.f32 1.442695, %v503_v61 }
 0x11d   :  { %v3119_v45 = vpop.eup %2653  ;;  %v412_v59 = vadd.f32 1.0, %v404_v16  ;;  %2665 = vpow2.f32 %v511_v53  ;;  %v500_v26 = vsub.f32 0.0, %v396_v52  ;;  %v3158_v34 = vsel %vm375_vm3, 1.0, %v2877_v8 }
 0x11e   :  { %v422_v50 = vmul.f32 1.0614054, %v3119_v45  ;;  %v403_v2 = vmul.f32 0.3275911, %v395_v62  ;;  %v519_v18 = vmul.f32 1.442695, %v506_v17  ;;  %v505_v46 = vmul.f32 %v497_v5, %v3112_v41 }
 0x11f   :  { %2667 = vrcp.f32 %v412_v59  ;;  %v499_v48 = vsub.f32 0.0, %v395_v62  ;;  %vm378_vm5 = vcmp.ge.f32.partialorder %v3103_v33, 0.0  ;;  %vm377_vm7 = vcmp.ge.f32.partialorder %v3106_v35, 0.0 }
 0x120   :  { %v430_v15 = vadd.f32 -1.4531521, %v422_v50  ;;  %2669 = vpow2.f32 %v509_v7  ;;  %v411_v27 = vadd.f32 1.0, %v403_v2  ;;  %v517_v61 = vmul.f32 1.442695, %v505_v46 }
 0x121   :  { %v3132_v21 = vpop.eup %2655  ;;  %2671 = vpow2.f32 %v515_v9  ;;  %v386_v63 = vsel %vm378_vm5, 1.0, %v2877_v8  ;;  %vm380_vm8 = vcmp.ge.f32.partialorder %v3117_v44, 0.0  ;;  %v360_v35 = vmul.f32 0.5, %v3088_v3 }
 0x122   :  { %v438_v57 = vmul.f32 %v3119_v45, %v430_v15  ;;  %v424_v58 = vmul.f32 1.0614054, %v3132_v21  ;;  %v3142_v60 = vpop.eup %2657  ;;  %2673 = vrcp.f32 %v411_v27  ;;  %v508_v15 = vmul.f32 %v500_v26, %v396_v52 }
 0x123   :  { %v3146_v0 = vpop.eup %2659  ;;  %v421_v6 = vmul.f32 1.0614054, %v3142_v60  ;;  %2675 = vpow2.f32 %v513_v12  ;;  %vm379_vm9 = vcmp.ge.f32.partialorder %v3138_v56, 0.0  ;;  %v364_v56 = vmul.f32 0.5, %v3109_v37 }
 0x124   :  { %v446_v1 = vadd.f32 1.4214138, %v438_v57  ;;  %v432_v4 = vadd.f32 -1.4531521, %v424_v58  ;;  %v423_v11 = vmul.f32 1.0614054, %v3146_v0  ;;  %2677 = vpow2.f32 %v519_v18 }
 0x125   :  { %v429_v31 = vadd.f32 -1.4531521, %v421_v6  ;;  %v3153_v13 = vpop.eup %2661  ;;  %2679 = vpow2.f32 %v517_v61 }
 0x126   :  { %v454_v22 = vmul.f32 %v3119_v45, %v446_v1  ;;  %v440_v23 = vmul.f32 %v3132_v21, %v432_v4  ;;  %v431_v24 = vadd.f32 -1.4531521, %v423_v11  ;;  %v426_v43 = vmul.f32 1.0614054, %v3153_v13  ;;  %v3166_v20 = vpop.eup %2663 }
 0x127   :  { %v437_v50 = vmul.f32 %v3142_v60, %v429_v31  ;;  %v2666_v55 = vpop.eup %2665  ;;  %v425_v7 = vmul.f32 1.0614054, %v3166_v20 }
 0x128   :  { %v462_v28 = vadd.f32 -0.28449672, %v454_v22  ;;  %v448_v30 = vadd.f32 1.4214138, %v440_v23  ;;  %v439_v36 = vmul.f32 %v3146_v0, %v431_v24  ;;  %v434_v19 = vadd.f32 -1.4531521, %v426_v43 }
 0x129   :  { %v445_v40 = vadd.f32 1.4214138, %v437_v50  ;;  %v3170_v57 = vpop.eup %2667  ;;  %v433_v9 = vadd.f32 -1.4531521, %v425_v7  ;;  %v523_v22 = vmul.f32 1.442695, %v508_v15  ;;  %v507_v23 = vmul.f32 %v499_v48, %v395_v62 }
 0x12a   :  { %v470_v38 = vmul.f32 %v3119_v45, %v462_v28  ;;  %v456_v39 = vmul.f32 %v3132_v21, %v448_v30  ;;  %v447_v47 = vadd.f32 1.4214138, %v439_v36  ;;  %v442_v59 = vmul.f32 %v3153_v13, %v434_v19  ;;  %v2670_v1 = vpop.eup %2669 }
 0x12b   :  { %v428_v52 = vmul.f32 1.0614054, %v3170_v57  ;;  %v453_v11 = vmul.f32 %v3142_v60, %v445_v40  ;;  %v441_v5 = vmul.f32 %v3166_v20, %v433_v9  ;;  %v2672_v12 = vpop.eup %2671  ;;  %2681 = vpow2.f32 %v523_v22 }
 0x12c   :  { %v478_v53 = vadd.f32 0.2548296, %v470_v38  ;;  %v464_v54 = vadd.f32 -0.28449672, %v456_v39  ;;  %v455_v16 = vmul.f32 %v3146_v0, %v447_v47  ;;  %v450_v2 = vadd.f32 1.4214138, %v442_v59  ;;  %v3182_v30 = vpop.eup %2673 }
 0x12d   :  { %v436_v6 = vadd.f32 -1.4531521, %v428_v52  ;;  %v461_v24 = vadd.f32 -0.28449672, %v453_v11  ;;  %v449_v36 = vadd.f32 1.4214138, %v441_v5  ;;  %v2676_v46 = vpop.eup %2675 }
 0x12e   :  { %v486_v41 = vmul.f32 %v3119_v45, %v478_v53  ;;  %v472_v58 = vmul.f32 %v3132_v21, %v464_v54  ;;  %v463_v4 = vadd.f32 -0.28449672, %v455_v16  ;;  %v458_v28 = vmul.f32 %v3153_v13, %v450_v2 }
 0x12f   :  { %v444_v62 = vmul.f32 %v3170_v57, %v436_v6  ;;  %v469_v18 = vmul.f32 %v3142_v60, %v461_v24  ;;  %v427_v39 = vmul.f32 1.0614054, %v3182_v30  ;;  %v521_v43 = vmul.f32 1.442695, %v507_v23 }
 0x130   :  { %v480_v17 = vadd.f32 0.2548296, %v472_v58  ;;  %v471_v45 = vmul.f32 %v3146_v0, %v463_v4  ;;  %v526_v26 = vmul.f32 %v2666_v55, %v486_v41  ;;  %v466_v38 = vadd.f32 -0.28449672, %v458_v28  ;;  %v2678_v55 = vpop.eup %2677 }
 0x131   :  { %v452_v48 = vadd.f32 1.4214138, %v444_v62  ;;  %v477_v50 = vadd.f32 0.2548296, %v469_v18  ;;  %v435_v15 = vadd.f32 -1.4531521, %v427_v39  ;;  %2683 = vpow2.f32 %v521_v43  ;;  %v2680_v5 = vpop.eup %2679 }
 0x132   :  { %v488_v27 = vmul.f32 %v3132_v21, %v480_v17  ;;  %v479_v31 = vadd.f32 0.2548296, %v471_v45  ;;  %v457_v21 = vmul.f32 %v3166_v20, %v449_v36  ;;  %v534_v53 = vsub.f32 1.0, %v526_v26 }
 0x133   :  { %v474_v19 = vmul.f32 %v3153_v13, %v466_v38  ;;  %v460_v40 = vmul.f32 %v3170_v57, %v452_v48  ;;  %v485_v41 = vmul.f32 %v3142_v60, %v477_v50  ;;  %v359_v62 = vmul.f32 0.5, %v3091_v10 }
 0x134   :  { %v487_v47 = vmul.f32 %v3146_v0, %v479_v31  ;;  %v528_v54 = vmul.f32 %v2672_v12, %v488_v27  ;;  %v465_v7 = vadd.f32 -0.28449672, %v457_v21  ;;  %v443_v0 = vmul.f32 %v3182_v30, %v435_v15 }
 0x135   :  { %v482_v58 = vadd.f32 0.2548296, %v474_v19  ;;  %v468_v4 = vadd.f32 -0.28449672, %v460_v40  ;;  %v525_v9 = vmul.f32 %v2670_v1, %v485_v41  ;;  %v542_v52 = vmul.f32 %v534_v53, %v3130_v14 }
 0x136   :  { %v527_v16 = vmul.f32 %v2676_v46, %v487_v47  ;;  %v473_v61 = vmul.f32 %v3166_v20, %v465_v7  ;;  %v536_v11 = vsub.f32 1.0, %v528_v54  ;;  %v451_v2 = vadd.f32 1.4214138, %v443_v0 }
 0x137   :  { %v490_v17 = vmul.f32 %v3153_v13, %v482_v58  ;;  %v476_v23 = vmul.f32 %v3170_v57, %v468_v4  ;;  %v533_v45 = vsub.f32 1.0, %v525_v9  ;;  %v381_v14 = vsel %vm373_vm4, 1.0, %v2877_v8 }
 0x138   :  { %v535_v59 = vsub.f32 1.0, %v527_v16  ;;  %v481_v22 = vadd.f32 0.2548296, %v473_v61  ;;  %v459_v24 = vmul.f32 %v3182_v30, %v451_v2  ;;  %v550_v27 = vadd.f32 1.0, %v542_v52 }
 0x139   :  { %v530_v6 = vmul.f32 %v2678_v55, %v490_v17  ;;  %v484_v12 = vadd.f32 0.2548296, %v476_v23  ;;  %v541_v26 = vmul.f32 %v533_v45, %v381_v14  ;;  %v544_v28 = vmul.f32 %v536_v11, %v3135_v25 }
 0x13a   :  { %v543_v60 = vmul.f32 %v535_v59, %v3158_v34  ;;  %v489_v13 = vmul.f32 %v3166_v20, %v481_v22  ;;  %v2682_v34 = vpop.eup %2681  ;;  %v467_v36 = vadd.f32 -0.28449672, %v459_v24  ;;  %v385_v20 = vsel %vm377_vm7, 1.0, %v2877_v8 }
 0x13b   :  { %v538_v31 = vsub.f32 1.0, %v530_v6  ;;  %v492_v38 = vmul.f32 %v3170_v57, %v484_v12  ;;  %v549_v39 = vadd.f32 1.0, %v541_v26  ;;  %v2684_v21 = vpop.eup %2683  ;;  %v558_v57 = vmul.f32 %v550_v27, %v3114_v42 }
 0x13c   :  { %v551_v1 = vadd.f32 1.0, %v543_v60  ;;  %v529_v18 = vmul.f32 %v2680_v5, %v489_v13  ;;  %v475_v25 = vmul.f32 %v3182_v30, %v467_v36  ;;  %v552_v48 = vadd.f32 1.0, %v544_v28 }
 0x13d   :  { %v532_v47 = vmul.f32 %v2682_v34, %v492_v38  ;;  %v557_v10 = vmul.f32 %v549_v39, %v3125_v51  ;;  %v546_v50 = vmul.f32 %v538_v31, %v386_v63  ;;  %v361_v15 = vmul.f32 0.5, %v3100_v32 }
 0x13e   :  { %v559_v43 = vmul.f32 %v551_v1, %v359_v62  ;;  %v537_v46 = vsub.f32 1.0, %v529_v18  ;;  %v483_v33 = vadd.f32 0.2548296, %v475_v25  ;;  %v388_v42 = vsel %vm380_vm8, 1.0, %v2877_v8 }
 0x13f   :  { %v540_v54 = vsub.f32 1.0, %v532_v47  ;;  %2526 = vmatprep.mubr.msk.f32.mxu1 %vm576_vm6, %v557_v10  ;;  %v560_v51 = vmul.f32 %v552_v48, %v360_v35  ;;  %v554_v16 = vadd.f32 1.0, %v546_v50  ;;  %v387_v32 = vsel %vm379_vm9, 1.0, %v2877_v8 }
 0x140   :  { %v545_v53 = vmul.f32 %v537_v46, %v385_v20  ;;  %v491_v19 = vmul.f32 %v3182_v30, %v483_v33  ;;  %2527 = vmatmul.mubr.msk.f32.vlgmr.msra.gmra.mrb[0].mxu1 %vm576_vm6, %v558_v57  ;;  %v362_v30 = vmul.f32 0.5, %v3098_v29  ;;  %v363_v59 = vmul.f32 0.5, %v3122_v49  ;;  %v939_v29 = vld [vmem:[%s3835_s3] sm:$0xff] }
 0x141   :  { %2529 = vmatprep.mubr.msk.f32.mxu1 %vm576_vm6, %v559_v43  ;;  %v548_v3 = vmul.f32 %v540_v54, %v388_v42  ;;  %2538 = vmatprep.subr.mxu0 %v939_v29  ;;  %v2364_v49 = vld [vmem:[%s3836_s7] ss:$0 sm:$0xff] }
 0x142   :  { %v553_v55 = vadd.f32 1.0, %v545_v53  ;;  %v531_v7 = vmul.f32 %v2684_v21, %v491_v19  ;;  %v562_v44 = vmul.f32 %v554_v16, %v362_v30  ;;  %2539 = vmatpush3.msra.mxu0 %v939_v29 }
 0x143   :  { %v556_v0 = vadd.f32 1.0, %v548_v3 }
 0x144   :  { %v561_v40 = vmul.f32 %v553_v55, %v361_v15  ;;  %v539_v41 = vsub.f32 1.0, %v531_v7  ;;  %2530 = vmatmul.mubr.msk.f32.gmra.mrb[2].mxu1 %vm576_vm6, %v560_v51 }
 0x145   :  { %v564_v9 = vmul.f32 %v556_v0, %v364_v56 }
 0x146   :  { %2532 = vmatprep.mubr.msk.f32.mxu1 %vm576_vm6, %v561_v40  ;;  %v547_v58 = vmul.f32 %v539_v41, %v387_v32 }
 0x148   :  { %v555_v61 = vadd.f32 1.0, %v547_v58  ;;  %2533 = vmatmul.mubr.msk.f32.gmra.mrb[4].mxu1 %vm576_vm6, %v562_v44 }
 0x14a   :  { %v563_v4 = vmul.f32 %v555_v61, %v363_v59 }
 0x14c   :  { %2535 = vmatprep.mubr.msk.f32.mxu1 %vm576_vm6, %v563_v4 }
 0x14d   :  { %2536 = vmatmul.mubr.msk.f32.gmra.mrb[6].mxu1 %vm576_vm6, %v564_v9 }
 0x213   :  { %v2528_v52 = vpop.f32.mrb[0].mxu1 }
 0x214   :  { %v3243_v11 = vadd.f32 %v2528_v52, %v2364_v49  ;;  %v667_v37 = vpop.f32.mrb[1].mxu1 }
 0x215   :  { %v3245_v17 = vadd.f32 %v2364_v49, %v667_v37 }
 0x216   :  { %v707_v2 = vmin.f32 %v3243_v11, 20.0  ;;  %vm715_vm11 = vcmp.gt.f32.partialorder %v3243_v11, 20.0 }
 0x217   :  { %v706_v60 = vmin.f32 %v3245_v17, 20.0  ;;  %v2531_v22 = vpop.f32.mrb[2].mxu1  ;;  %vm714_vm12 = vcmp.gt.f32.partialorder %v3245_v17, 20.0 }
 0x218   :  { %v724_v23 = vmul.f32 1.442695, %v707_v2  ;;  %v3249_v45 = vadd.f32 %v2531_v22, %v2364_v49  ;;  %v677_v5 = vpop.f32.mrb[3].mxu1 }
 0x219   :  { %v722_v6 = vmul.f32 1.442695, %v706_v60  ;;  %v3251_v24 = vadd.f32 %v2364_v49, %v677_v5 }
 0x21a   :  { %2685 = vpow2.f32 %v724_v23  ;;  %v709_v14 = vmin.f32 %v3249_v45, 20.0  ;;  %vm717_vm13 = vcmp.gt.f32.partialorder %v3249_v45, 20.0 }
 0x21b   :  { %2687 = vpow2.f32 %v722_v6  ;;  %v708_v1 = vmin.f32 %v3251_v24, 20.0  ;;  %v2534_v13 = vpop.f32.mrb[4].mxu1  ;;  %vm716_vm14 = vcmp.gt.f32.partialorder %v3251_v24, 20.0 }
 0x21c   :  { %v728_v12 = vmul.f32 1.442695, %v709_v14  ;;  %v3255_v26 = vadd.f32 %v2534_v13, %v2364_v49  ;;  %v687_v34 = vpop.f32.mrb[5].mxu1 }
 0x21d   :  { %v726_v27 = vmul.f32 1.442695, %v708_v1  ;;  %v3257_v28 = vadd.f32 %v2364_v49, %v687_v34 }
 0x21e   :  { %2689 = vpow2.f32 %v728_v12  ;;  %v711_v31 = vmin.f32 %v3255_v26, 20.0  ;;  %vm719_vm15 = vcmp.gt.f32.partialorder %v3255_v26, 20.0 }
 0x21f   :  { %2691 = vpow2.f32 %v726_v27  ;;  %v710_v36 = vmin.f32 %v3257_v28, 20.0  ;;  %vm718_vm0 = vcmp.gt.f32.partialorder %v3257_v28, 20.0 }
 0x220   :  { %v732_v62 = vmul.f32 1.442695, %v711_v31  ;;  %v2537_v18 = vpop.f32.mrb[6].mxu1 }
 0x221   :  { %v730_v38 = vmul.f32 1.442695, %v710_v36  ;;  %v3261_v39 = vadd.f32 %v2537_v18, %v2364_v49  ;;  %v697_v63 = vpop.f32.mrb[7].mxu1 }
 0x222   :  { %2693 = vpow2.f32 %v732_v62  ;;  %v3263_v20 = vadd.f32 %v2364_v49, %v697_v63 }
 0x223   :  { %2695 = vpow2.f32 %v730_v38  ;;  %v713_v25 = vmin.f32 %v3261_v39, 20.0  ;;  %vm721_vm1 = vcmp.gt.f32.partialorder %v3261_v39, 20.0 }
 0x224   :  { %v2686_v43 = vpop.eup %2685  ;;  %v712_v46 = vmin.f32 %v3263_v20, 20.0  ;;  %vm720_vm2 = vcmp.gt.f32.partialorder %v3263_v20, 20.0 }
 0x225   :  { %v2688_v47 = vpop.eup %2687  ;;  %v739_v10 = vadd.f32 1.0, %v2686_v43  ;;  %v736_v21 = vmul.f32 1.442695, %v713_v25 }
 0x226   :  { %v738_v57 = vadd.f32 1.0, %v2688_v47  ;;  %v734_v48 = vmul.f32 1.442695, %v712_v46 }
 0x227   :  { %2697 = vlog2.f32 %v739_v10 }
 0x228   :  { %v2690_v50 = vpop.eup %2689  ;;  %2699 = vlog2.f32 %v738_v57 }
 0x229   :  { %v2692_v33 = vpop.eup %2691  ;;  %v741_v53 = vadd.f32 1.0, %v2690_v50  ;;  %2701 = vpow2.f32 %v736_v21 }
 0x22a   :  { %v740_v54 = vadd.f32 1.0, %v2692_v33  ;;  %2703 = vpow2.f32 %v734_v48 }
 0x22b   :  { %2705 = vlog2.f32 %v741_v53 }
 0x22c   :  { %v2694_v35 = vpop.eup %2693  ;;  %2707 = vlog2.f32 %v740_v54 }
 0x22d   :  { %v2696_v19 = vpop.eup %2695  ;;  %v743_v15 = vadd.f32 1.0, %v2694_v35 }
 0x22e   :  { %v742_v55 = vadd.f32 1.0, %v2696_v19 }
 0x22f   :  { %2709 = vlog2.f32 %v743_v15 }
 0x230   :  { %2711 = vlog2.f32 %v742_v55 }
 0x231   :  { %v2698_v42 = vpop.eup %2697 }
 0x232   :  { %v2700_v51 = vpop.eup %2699  ;;  %v749_v16 = vmul.f32 0.6931472, %v2698_v42 }
 0x233   :  { %v2702_v7 = vpop.eup %2701  ;;  %v747_v40 = vmul.f32 0.6931472, %v2700_v51 }
 0x234   :  { %v2704_v3 = vpop.eup %2703  ;;  %v3269_v30 = vsel %vm715_vm11, %v3243_v11, %v749_v16  ;;  %v745_v41 = vadd.f32 1.0, %v2702_v7 }
 0x235   :  { %v2706_v32 = vpop.eup %2705  ;;  %v778_v44 = vsel %vm770_vm10, %v3269_v30, 0.0  ;;  %v3275_v58 = vsel %vm714_vm12, %v3245_v17, %v747_v40  ;;  %v744_v0 = vadd.f32 1.0, %v2704_v3 }
 0x236   :  { %v2708_v59 = vpop.eup %2707  ;;  %v779_v61 = vrot.slane %v778_v44, 4  ;;  %v771_v56 = vsel %vm770_vm10, %v3275_v58, 0.0  ;;  %v753_v4 = vmul.f32 0.6931472, %v2706_v32  ;;  %2713 = vlog2.f32 %v745_v41 }
 0x237   :  { %v772_v9 = vrot.slane %v771_v56, 4  ;;  %v751_v29 = vmul.f32 0.6931472, %v2708_v59  ;;  %2715 = vlog2.f32 %v744_v0 }
 0x238   :  { %v780_v49 = vadd.f32 %v779_v61, %v778_v44  ;;  %v3281_v52 = vsel %vm717_vm13, %v3249_v45, %v753_v4 }
 0x239   :  { %v2710_v11 = vpop.eup %2709  ;;  %v773_v37 = vadd.f32 %v772_v9, %v771_v56  ;;  %v792_v17 = vsel %vm770_vm10, %v3281_v52, 0.0  ;;  %v3287_v2 = vsel %vm716_vm14, %v3251_v24, %v751_v29 }
 0x23a   :  { %v2712_v60 = vpop.eup %2711  ;;  %v781_v22 = vrot.slane %v780_v49, 2  ;;  %v793_v23 = vrot.slane %v792_v17, 4  ;;  %v785_v5 = vsel %vm770_vm10, %v3287_v2, 0.0  ;;  %v757_v6 = vmul.f32 0.6931472, %v2710_v11 }
 0x23b   :  { %v774_v14 = vrot.slane %v773_v37, 2  ;;  %v786_v45 = vrot.slane %v785_v5, 4  ;;  %v755_v1 = vmul.f32 0.6931472, %v2712_v60 }
 0x23c   :  { %v782_v13 = vadd.f32 %v781_v22, %v780_v49  ;;  %v794_v12 = vadd.f32 %v793_v23, %v792_v17  ;;  %v3293_v34 = vsel %vm719_vm15, %v3255_v26, %v757_v6 }
 0x23d   :  { %v775_v24 = vadd.f32 %v774_v14, %v773_v37  ;;  %v787_v27 = vadd.f32 %v786_v45, %v785_v5  ;;  %v806_v31 = vsel %vm770_vm10, %v3293_v34, 0.0  ;;  %v3299_v36 = vsel %vm718_vm0, %v3257_v28, %v755_v1 }
 0x23e   :  { %v783_v62 = vrot.slane %v782_v13, 1  ;;  %v795_v18 = vrot.slane %v794_v12, 2  ;;  %v807_v38 = vrot.slane %v806_v31, 4  ;;  %v799_v63 = vsel %vm770_vm10, %v3299_v36, 0.0 }
 0x23f   :  { %v776_v25 = vrot.slane %v775_v24, 1  ;;  %v788_v43 = vrot.slane %v787_v27, 2  ;;  %v800_v26 = vrot.slane %v799_v63, 4 }
 0x240   :  { %v2714_v46 = vpop.eup %2713  ;;  %v784_v47 = vadd.f32 %v783_v62, %v782_v13  ;;  %v796_v10 = vadd.f32 %v795_v18, %v794_v12  ;;  %v808_v21 = vadd.f32 %v807_v38, %v806_v31 }
 0x241   :  { %v2716_v57 = vpop.eup %2715  ;;  %v777_v28 = vadd.f32 %v776_v25, %v775_v24  ;;  %v789_v48 = vadd.f32 %v788_v43, %v787_v27  ;;  %v801_v50 = vadd.f32 %v800_v26, %v799_v63  ;;  %v761_v33 = vmul.f32 0.6931472, %v2714_v46 }
 0x242   :  { %v828_v53 = vmul.f32 0.125, %v784_v47  ;;  %v797_v54 = vrot.slane %v796_v10, 1  ;;  %v809_v35 = vrot.slane %v808_v21, 2  ;;  %v759_v19 = vmul.f32 0.6931472, %v2716_v57 }
 0x243   :  { %v827_v15 = vmul.f32 0.125, %v777_v28  ;;  %v790_v55 = vrot.slane %v789_v48, 1  ;;  %v802_v42 = vrot.slane %v801_v50, 2  ;;  %v3308_v51 = vsel %vm721_vm1, %v3261_v39, %v761_v33 }
 0x244   :  { %v3311_v16 = vsub.f32 %v3269_v30, %v828_v53  ;;  %v798_v7 = vadd.f32 %v797_v54, %v796_v10  ;;  %v810_v40 = vadd.f32 %v809_v35, %v808_v21  ;;  %v820_v3 = vsel %vm770_vm10, %v3308_v51, 0.0 }
 0x245   :  { %v3316_v41 = vsub.f32 %v3275_v58, %v827_v15  ;;  %v791_v32 = vadd.f32 %v790_v55, %v789_v48  ;;  %v803_v44 = vadd.f32 %v802_v42, %v801_v50  ;;  %v821_v0 = vrot.slane %v820_v3, 4 }
 0x246   :  { %v844_v59 = vmul.f32 %v3311_v16, %v3311_v16  ;;  %v830_v61 = vmul.f32 0.125, %v798_v7  ;;  %v811_v39 = vrot.slane %v810_v40, 1  ;;  %v3323_v30 = vsel %vm720_vm2, %v3263_v20, %v759_v19 }
 0x247   :  { %v843_v56 = vmul.f32 %v3316_v41, %v3316_v41  ;;  %v829_v4 = vmul.f32 0.125, %v791_v32  ;;  %v804_v9 = vrot.slane %v803_v44, 1  ;;  %v822_v58 = vadd.f32 %v821_v0, %v820_v3 }
 0x248   :  { %v858_v29 = vsel %vm770_vm10, %v844_v59, 0.0  ;;  %v3329_v49 = vsub.f32 %v3281_v52, %v830_v61  ;;  %v812_v11 = vadd.f32 %v811_v39, %v810_v40  ;;  %v813_v37 = vsel %vm770_vm10, %v3323_v30, 0.0 }
 0x249   :  { %v859_v17 = vrot.slane %v858_v29, 4  ;;  %v851_v60 = vsel %vm770_vm10, %v843_v56, 0.0  ;;  %v3335_v20 = vsub.f32 %v3287_v2, %v829_v4  ;;  %v805_v22 = vadd.f32 %v804_v9, %v803_v44 }
 0x24a   :  { %v852_v23 = vrot.slane %v851_v60, 4  ;;  %v846_v5 = vmul.f32 %v3329_v49, %v3329_v49  ;;  %v832_v6 = vmul.f32 0.125, %v812_v11  ;;  %v823_v14 = vrot.slane %v822_v58, 2 }
 0x24b   :  { %v860_v45 = vadd.f32 %v859_v17, %v858_v29  ;;  %v845_v52 = vmul.f32 %v3335_v20, %v3335_v20  ;;  %v831_v1 = vmul.f32 0.125, %v805_v22  ;;  %v814_v13 = vrot.slane %v813_v37, 4 }
 0x24c   :  { %v853_v12 = vadd.f32 %v852_v23, %v851_v60  ;;  %v872_v24 = vsel %vm770_vm10, %v846_v5, 0.0  ;;  %v3343_v27 = vsub.f32 %v3293_v34, %v832_v6  ;;  %v824_v2 = vadd.f32 %v823_v14, %v822_v58 }
 0x24d   :  { %v861_v31 = vrot.slane %v860_v45, 2  ;;  %v873_v62 = vrot.slane %v872_v24, 4  ;;  %v865_v18 = vsel %vm770_vm10, %v845_v52, 0.0  ;;  %v3347_v38 = vsub.f32 %v3299_v36, %v831_v1 }
 0x24e   :  { %v854_v63 = vrot.slane %v853_v12, 2  ;;  %v866_v25 = vrot.slane %v865_v18, 4  ;;  %v848_v43 = vmul.f32 %v3343_v27, %v3343_v27  ;;  %v825_v26 = vrot.slane %v824_v2, 1 }
 0x24f   :  { %v862_v46 = vadd.f32 %v861_v31, %v860_v45  ;;  %v874_v47 = vadd.f32 %v873_v62, %v872_v24  ;;  %v847_v34 = vmul.f32 %v3347_v38, %v3347_v38  ;;  %v815_v10 = vadd.f32 %v814_v13, %v813_v37 }
 0x250   :  { %v855_v21 = vadd.f32 %v854_v63, %v853_v12  ;;  %v867_v57 = vadd.f32 %v866_v25, %v865_v18  ;;  %v886_v28 = vsel %vm770_vm10, %v848_v43, 0.0  ;;  %v826_v48 = vadd.f32 %v825_v26, %v824_v2 }
 0x251   :  { %v863_v50 = vrot.slane %v862_v46, 1  ;;  %v875_v36 = vrot.slane %v874_v47, 2  ;;  %v887_v33 = vrot.slane %v886_v28, 4  ;;  %v879_v53 = vsel %vm770_vm10, %v847_v34, 0.0 }
 0x252   :  { %v856_v54 = vrot.slane %v855_v21, 1  ;;  %v868_v35 = vrot.slane %v867_v57, 2  ;;  %v880_v19 = vrot.slane %v879_v53, 4  ;;  %v834_v15 = vmul.f32 0.125, %v826_v48 }
 0x253   :  { %v864_v55 = vadd.f32 %v863_v50, %v862_v46  ;;  %v876_v42 = vadd.f32 %v875_v36, %v874_v47  ;;  %v888_v7 = vadd.f32 %v887_v33, %v886_v28  ;;  %v816_v40 = vrot.slane %v815_v10, 2 }
 0x254   :  { %v857_v3 = vadd.f32 %v856_v54, %v855_v21  ;;  %v869_v32 = vadd.f32 %v868_v35, %v867_v57  ;;  %v881_v44 = vadd.f32 %v880_v19, %v879_v53  ;;  %v3356_v0 = vsub.f32 %v3308_v51, %v834_v15 }
 0x255   :  { %v908_v59 = vmul.f32 0.125, %v864_v55  ;;  %v877_v61 = vrot.slane %v876_v42, 1  ;;  %v889_v39 = vrot.slane %v888_v7, 2  ;;  %v817_v56 = vadd.f32 %v816_v40, %v815_v10 }
 0x256   :  { %v907_v4 = vmul.f32 0.125, %v857_v3  ;;  %v870_v9 = vrot.slane %v869_v32, 1  ;;  %v882_v58 = vrot.slane %v881_v44, 2  ;;  %v850_v29 = vmul.f32 %v3356_v0, %v3356_v0 }
 0x257   :  { %v916_v11 = vadd.f32 1e-05, %v908_v59  ;;  %v878_v37 = vadd.f32 %v877_v61, %v876_v42  ;;  %v890_v17 = vadd.f32 %v889_v39, %v888_v7  ;;  %v818_v60 = vrot.slane %v817_v56, 1 }
 0x258   :  { %v915_v22 = vadd.f32 1e-05, %v907_v4  ;;  %v871_v23 = vadd.f32 %v870_v9, %v869_v32  ;;  %v883_v5 = vadd.f32 %v882_v58, %v881_v44  ;;  %v900_v51 = vsel %vm770_vm10, %v850_v29, 0.0 }
 0x259   :  { %2717 = vrsqrt.f32 %v916_v11  ;;  %v910_v6 = vmul.f32 0.125, %v878_v37  ;;  %v891_v14 = vrot.slane %v890_v17, 1  ;;  %v901_v45 = vrot.slane %v900_v51, 4 }
 0x25a   :  { %2719 = vrsqrt.f32 %v915_v22  ;;  %v909_v52 = vmul.f32 0.125, %v871_v23  ;;  %v884_v1 = vrot.slane %v883_v5, 1  ;;  %v819_v13 = vadd.f32 %v818_v60, %v817_v56 }
 0x25b   :  { %v918_v12 = vadd.f32 1e-05, %v910_v6  ;;  %v892_v24 = vadd.f32 %v891_v14, %v890_v17  ;;  %v902_v2 = vadd.f32 %v901_v45, %v900_v51 }
 0x25c   :  { %v917_v31 = vadd.f32 1e-05, %v909_v52  ;;  %v885_v62 = vadd.f32 %v884_v1, %v883_v5  ;;  %v833_v18 = vmul.f32 0.125, %v819_v13 }
 0x25d   :  { %2721 = vrsqrt.f32 %v918_v12  ;;  %v912_v63 = vmul.f32 0.125, %v892_v24  ;;  %v903_v25 = vrot.slane %v902_v2, 2 }
 0x25e   :  { %2723 = vrsqrt.f32 %v917_v31  ;;  %v911_v43 = vmul.f32 0.125, %v885_v62  ;;  %v841_v26 = vsub.f32 %v3323_v30, %v833_v18 }
 0x25f   :  { %v920_v46 = vadd.f32 1e-05, %v912_v63  ;;  %v904_v47 = vadd.f32 %v903_v25, %v902_v2 }
 0x260   :  { %v919_v34 = vadd.f32 1e-05, %v911_v43  ;;  %v849_v10 = vmul.f32 %v841_v26, %v841_v26 }
 0x261   :  { %2725 = vrsqrt.f32 %v920_v46  ;;  %v905_v21 = vrot.slane %v904_v47, 1 }
 0x262   :  { %2727 = vrsqrt.f32 %v919_v34  ;;  %v893_v57 = vsel %vm770_vm10, %v849_v10, 0.0 }
 0x263   :  { %v2718_v28 = vpop.eup %2717  ;;  %v894_v48 = vrot.slane %v893_v57, 4  ;;  %v906_v54 = vadd.f32 %v905_v21, %v904_v47 }
 0x264   :  { %v2720_v50 = vpop.eup %2719  ;;  %v932_v53 = vmul.f32 %v2718_v28, %v3311_v16 }
 0x265   :  { %v895_v36 = vadd.f32 %v894_v48, %v893_v57  ;;  %v931_v33 = vmul.f32 %v2720_v50, %v3316_v41  ;;  %v914_v42 = vmul.f32 0.125, %v906_v54 }
 0x267   :  { %v2722_v35 = vpop.eup %2721  ;;  %v896_v30 = vrot.slane %v895_v36, 2  ;;  %2540 = vmatprep.mubr.msk.f32.mxu0 %vm770_vm10, %v931_v33  ;;  %v922_v44 = vadd.f32 1e-05, %v914_v42 }
 0x268   :  { %v2724_v19 = vpop.eup %2723  ;;  %2541 = vmatmul.mubr.msk.f32.vlgmr.msra.gmra.mrb[8].mxu0 %vm770_vm10, %v932_v53  ;;  %v934_v7 = vmul.f32 %v2722_v35, %v3329_v49 }
 0x269   :  { %v897_v15 = vadd.f32 %v896_v30, %v895_v36  ;;  %v933_v55 = vmul.f32 %v2724_v19, %v3335_v20  ;;  %2729 = vrsqrt.f32 %v922_v44 }
 0x26b   :  { %v2726_v40 = vpop.eup %2725  ;;  %v898_v3 = vrot.slane %v897_v15, 1  ;;  %2543 = vmatprep.mubr.msk.f32.mxu0 %vm770_vm10, %v933_v55 }
 0x26c   :  { %v2728_v41 = vpop.eup %2727  ;;  %2544 = vmatmul.mubr.msk.f32.gmra.mrb[10].mxu0 %vm770_vm10, %v934_v7  ;;  %v936_v59 = vmul.f32 %v2726_v40, %v3343_v27  ;;  %v1348_v27 = vld [vmem:[%s3837_s4] sm:$0xff] }
 0x26d   :  { %v899_v16 = vadd.f32 %v898_v3, %v897_v15  ;;  %v935_v32 = vmul.f32 %v2728_v41, %v3347_v38  ;;  %2552 = vmatprep.subr.mxu1 %v1348_v27  ;;  %v3384_v38 = vld [vmem:[%s3838_s8] ss:$0 sm:$0xff] }
 0x26e   :  { %2553 = vmatpush3.msra.mxu1 %v1348_v27 }
 0x26f   :  { %v913_v61 = vmul.f32 0.125, %v899_v16  ;;  %2546 = vmatprep.mubr.msk.f32.mxu0 %vm770_vm10, %v935_v32 }
 0x270   :  { %2547 = vmatmul.mubr.msk.f32.gmra.mrb[12].mxu0 %vm770_vm10, %v936_v59 }
 0x271   :  { %v921_v20 = vadd.f32 1e-05, %v913_v61 }
 0x273   :  { %2731 = vrsqrt.f32 %v921_v20  ;;  %v2730_v49 = vpop.eup %2729 }
 0x274   :  { %v938_v4 = vmul.f32 %v2730_v49, %v3356_v0 }
 0x27d   :  { %v2732_v39 = vpop.eup %2731 }
 0x27e   :  { %v937_v56 = vmul.f32 %v2732_v39, %v841_v26 }
 0x280   :  { %2549 = vmatprep.mubr.msk.f32.mxu0 %vm770_vm10, %v937_v56 }
 0x281   :  { %2550 = vmatmul.mubr.msk.f32.gmra.mrb[14].mxu0 %vm770_vm10, %v938_v4 }
 0x33b   :  { %v2542_v9 = vpop.f32.mrb[8].mxu0 }
 0x33c   :  { %v3387_v58 = vadd.f32 %v2542_v9, %v3384_v38  ;;  %v1037_v0 = vpop.f32.mrb[9].mxu0 }
 0x33d   :  { %v3390_v29 = vadd.f32 %v3384_v38, %v1037_v0 }
 0x33e   :  { %v1085_v11 = vmul.f32 0.70710677, %v3387_v58  ;;  %v3436_v15 = vmul.f32 0.5, %v3387_v58 }
 0x33f   :  { %v3394_v37 = vmul.f32 0.70710677, %v3390_v29  ;;  %v2545_v17 = vpop.f32.mrb[10].mxu0  ;;  %v3443_v3 = vmul.f32 0.5, %v3390_v29 }
 0x340   :  { %v1109_v60 = vand.u32 2147483647, %v1085_v11  ;;  %v3397_v22 = vadd.f32 %v2545_v17, %v3384_v38  ;;  %v1047_v23 = vpop.f32.mrb[11].mxu0  ;;  %vm1093_vm3 = vcmp.ge.f32.partialorder %v1085_v11, 0.0 }
 0x341   :  { %v1108_v5 = vand.u32 2147483647, %v3394_v37  ;;  %v3401_v51 = vadd.f32 %v3384_v38, %v1047_v23  ;;  %v3440_v7 = vsel %vm1093_vm3, 1.0, %v2877_v8  ;;  %vm1092_vm4 = vcmp.ge.f32.partialorder %v3394_v37, 0.0 }
 0x342   :  { %v1117_v6 = vmul.f32 0.3275911, %v1109_v60  ;;  %v3404_v14 = vmul.f32 0.70710677, %v3397_v22  ;;  %v1213_v10 = vsub.f32 0.0, %v1109_v60 }
 0x343   :  { %v1116_v45 = vmul.f32 0.3275911, %v1108_v5  ;;  %v3407_v52 = vmul.f32 0.70710677, %v3401_v51  ;;  %v2548_v1 = vpop.f32.mrb[12].mxu0  ;;  %v1212_v21 = vsub.f32 0.0, %v1108_v5 }
 0x344   :  { %v1125_v13 = vadd.f32 1.0, %v1117_v6  ;;  %v1111_v12 = vand.u32 2147483647, %v3404_v14  ;;  %v3411_v24 = vadd.f32 %v2548_v1, %v3384_v38  ;;  %v1057_v2 = vpop.f32.mrb[13].mxu0  ;;  %v1221_v33 = vmul.f32 %v1213_v10, %v1109_v60 }
 0x345   :  { %v1124_v31 = vadd.f32 1.0, %v1116_v45  ;;  %v1110_v62 = vand.u32 2147483647, %v3407_v52  ;;  %v3415_v18 = vadd.f32 %v3384_v38, %v1057_v2  ;;  %v1220_v53 = vmul.f32 %v1212_v21, %v1108_v5 }
 0x346   :  { %2733 = vrcp.f32 %v1125_v13  ;;  %v1119_v63 = vmul.f32 0.3275911, %v1111_v12  ;;  %v3418_v26 = vmul.f32 0.70710677, %v3411_v24  ;;  %v1215_v28 = vsub.f32 0.0, %v1111_v12 }
 0x347   :  { %2735 = vrcp.f32 %v1124_v31  ;;  %v1118_v25 = vmul.f32 0.3275911, %v1110_v62  ;;  %v3421_v47 = vmul.f32 0.70710677, %v3415_v18  ;;  %v1214_v36 = vsub.f32 0.0, %v1110_v62 }
 0x348   :  { %v1127_v43 = vadd.f32 1.0, %v1119_v63  ;;  %v3424_v34 = vand.u32 2147483647, %v3418_v26  ;;  %v1223_v35 = vmul.f32 %v1215_v28, %v1111_v12  ;;  %v1230_v32 = vmul.f32 1.442695, %v1221_v33 }
 0x349   :  { %v1126_v46 = vadd.f32 1.0, %v1118_v25  ;;  %v3427_v57 = vand.u32 2147483647, %v3421_v47  ;;  %v1222_v40 = vmul.f32 %v1214_v36, %v1110_v62  ;;  %v1228_v44 = vmul.f32 1.442695, %v1220_v53 }
 0x34a   :  { %2737 = vrcp.f32 %v1127_v43  ;;  %v1121_v48 = vmul.f32 0.3275911, %v3424_v34  ;;  %v1234_v61 = vmul.f32 1.442695, %v1223_v35  ;;  %vm1094_vm5 = vcmp.ge.f32.partialorder %v3407_v52, 0.0 }
 0x34b   :  { %2739 = vrcp.f32 %v1126_v46  ;;  %v1120_v50 = vmul.f32 0.3275911, %v3427_v57  ;;  %v1232_v0 = vmul.f32 1.442695, %v1222_v40  ;;  %v1216_v46 = vsub.f32 0.0, %v3427_v57 }
 0x34c   :  { %v1129_v42 = vadd.f32 1.0, %v1121_v48  ;;  %v1100_v21 = vsel %vm1092_vm4, 1.0, %v2877_v8  ;;  %v3480_v52 = vsel %vm1094_vm5, 1.0, %v2877_v8  ;;  %vm1095_vm6 = vcmp.ge.f32.partialorder %v3404_v14, 0.0 }
 0x34d   :  { %v1128_v30 = vadd.f32 1.0, %v1120_v50  ;;  %vm1096_vm7 = vcmp.ge.f32.partialorder %v3421_v47, 0.0  ;;  %vm1097_vm8 = vcmp.ge.f32.partialorder %v3418_v26, 0.0  ;;  %vm1292_vm4 = vcmp.gt.f32.partialorder %v3390_v29, 20.0 }
 0x34e   :  { %vm1589_vm5 = vcmask 130112  }
 0x34f   :  { %2741 = vrcp.f32 %v1128_v30 }
 0x350   :  { %v3431_v54 = vpop.eup %2733  ;;  %2743 = vrcp.f32 %v1129_v42 }
 0x351   :  { %v3433_v19 = vpop.eup %2735  ;;  %v1141_v55 = vmul.f32 1.0614054, %v3431_v54  ;;  %2745 = vpow2.f32 %v1230_v32 }
 0x352   :  { %v1140_v41 = vmul.f32 1.0614054, %v3433_v19  ;;  %2747 = vpow2.f32 %v1228_v44 }
 0x353   :  { %v1149_v16 = vadd.f32 -1.4531521, %v1141_v55  ;;  %2749 = vpow2.f32 %v1234_v61 }
 0x354   :  { %v3446_v59 = vpop.eup %2737  ;;  %v2551_v20 = vpop.f32.mrb[14].mxu0  ;;  %v1148_v49 = vadd.f32 -1.4531521, %v1140_v41  ;;  %2751 = vpow2.f32 %v1232_v0  ;;  %v1224_v41 = vmul.f32 %v1216_v46, %v3427_v57 }
 0x355   :  { %v3449_v39 = vpop.eup %2739  ;;  %v1157_v56 = vmul.f32 %v3431_v54, %v1149_v16  ;;  %v3453_v4 = vadd.f32 %v2551_v20, %v3384_v38  ;;  %v1067_v27 = vpop.f32.mrb[15].mxu0  ;;  %v1143_v9 = vmul.f32 1.0614054, %v3446_v59 }
 0x356   :  { %v3457_v11 = vadd.f32 %v3384_v38, %v1067_v27  ;;  %v1156_v17 = vmul.f32 %v3433_v19, %v1148_v49  ;;  %v1142_v60 = vmul.f32 1.0614054, %v3449_v39  ;;  %v1217_v38 = vsub.f32 0.0, %v3424_v34 }
 0x357   :  { %v1165_v23 = vadd.f32 1.4214138, %v1157_v56  ;;  %v3462_v5 = vmul.f32 0.70710677, %v3453_v4  ;;  %v1151_v6 = vadd.f32 -1.4531521, %v1143_v9 }
 0x358   :  { %v3465_v45 = vmul.f32 0.70710677, %v3457_v11  ;;  %v1164_v1 = vadd.f32 1.4214138, %v1156_v17  ;;  %v1150_v13 = vadd.f32 -1.4531521, %v1142_v60  ;;  %v1225_v35 = vmul.f32 %v1217_v38, %v3424_v34 }
 0x359   :  { %v1173_v12 = vmul.f32 %v3431_v54, %v1165_v23  ;;  %v1115_v2 = vand.u32 2147483647, %v3462_v5  ;;  %v1159_v25 = vmul.f32 %v3446_v59, %v1151_v6  ;;  %v3483_v53 = vpop.eup %2741  ;;  %v1236_v23 = vmul.f32 1.442695, %v1224_v41 }
 0x35a   :  { %v1114_v31 = vand.u32 2147483647, %v3465_v45  ;;  %v1172_v62 = vmul.f32 %v3433_v19, %v1164_v1  ;;  %v1158_v63 = vmul.f32 %v3449_v39, %v1150_v13  ;;  %v3487_v42 = vpop.eup %2743  ;;  %v1144_v56 = vmul.f32 1.0614054, %v3483_v53 }
 0x35b   :  { %v1181_v43 = vadd.f32 -0.28449672, %v1173_v12  ;;  %v1123_v10 = vmul.f32 0.3275911, %v1115_v2  ;;  %v1167_v37 = vadd.f32 1.4214138, %v1159_v25  ;;  %v2746_v61 = vpop.eup %2745 }
 0x35c   :  { %v1122_v28 = vmul.f32 0.3275911, %v1114_v31  ;;  %v1180_v48 = vadd.f32 -0.28449672, %v1172_v62  ;;  %v1166_v33 = vadd.f32 1.4214138, %v1158_v63  ;;  %v2748_v27 = vpop.eup %2747 }
 0x35d   :  { %v1189_v50 = vmul.f32 %v3431_v54, %v1181_v43  ;;  %v1131_v36 = vadd.f32 1.0, %v1123_v10  ;;  %v1175_v44 = vmul.f32 %v3446_v59, %v1167_v37  ;;  %v1219_v20 = vsub.f32 0.0, %v1115_v2  ;;  %v2750_v46 = vpop.eup %2749 }
 0x35e   :  { %v1130_v30 = vadd.f32 1.0, %v1122_v28  ;;  %v1188_v55 = vmul.f32 %v3433_v19, %v1180_v48  ;;  %v1174_v16 = vmul.f32 %v3449_v39, %v1166_v33  ;;  %v1238_v9 = vmul.f32 1.442695, %v1225_v35  ;;  %v2752_v48 = vpop.eup %2751 }
 0x35f   :  { %v1197_v40 = vadd.f32 0.2548296, %v1189_v50  ;;  %2753 = vrcp.f32 %v1131_v36  ;;  %v1183_v0 = vadd.f32 -0.28449672, %v1175_v44  ;;  %v1145_v17 = vmul.f32 1.0614054, %v3487_v42 }
 0x360   :  { %2755 = vrcp.f32 %v1130_v30  ;;  %v1196_v32 = vadd.f32 0.2548296, %v1188_v55  ;;  %v1182_v49 = vadd.f32 -0.28449672, %v1174_v16  ;;  %v1152_v1 = vadd.f32 -1.4531521, %v1144_v56 }
 0x361   :  { %v1205_v34 = vmul.f32 %v3431_v54, %v1197_v40  ;;  %v1218_v13 = vsub.f32 0.0, %v1114_v31  ;;  %v1191_v54 = vmul.f32 %v3446_v59, %v1183_v0  ;;  %v1153_v38 = vadd.f32 -1.4531521, %v1145_v17 }
 0x362   :  { %v1204_v57 = vmul.f32 %v3433_v19, %v1196_v32  ;;  %v1190_v6 = vmul.f32 %v3449_v39, %v1182_v49  ;;  %v1227_v63 = vmul.f32 %v1219_v20, %v1115_v2  ;;  %v1160_v43 = vmul.f32 %v3483_v53, %v1152_v1 }
 0x363   :  { %v1245_v60 = vmul.f32 %v2746_v61, %v1205_v34  ;;  %2757 = vpow2.f32 %v1238_v9  ;;  %v1199_v10 = vadd.f32 0.2548296, %v1191_v54  ;;  %v1161_v28 = vmul.f32 %v3487_v42, %v1153_v38 }
 0x364   :  { %v1244_v12 = vmul.f32 %v2748_v27, %v1204_v57  ;;  %v1198_v25 = vadd.f32 0.2548296, %v1190_v6  ;;  %2759 = vpow2.f32 %v1236_v23  ;;  %v1168_v33 = vadd.f32 1.4214138, %v1160_v43 }
 0x365   :  { %v1253_v62 = vsub.f32 1.0, %v1245_v60  ;;  %v1226_v35 = vmul.f32 %v1218_v13, %v1114_v31  ;;  %v1207_v2 = vmul.f32 %v3446_v59, %v1199_v10  ;;  %v1169_v55 = vadd.f32 1.4214138, %v1161_v28 }
 0x366   :  { %v1252_v19 = vsub.f32 1.0, %v1244_v12  ;;  %v1206_v36 = vmul.f32 %v3449_v39, %v1198_v25  ;;  %v1242_v41 = vmul.f32 1.442695, %v1227_v63  ;;  %v1176_v32 = vmul.f32 %v3483_v53, %v1168_v33 }
 0x367   :  { %v1261_v50 = vmul.f32 %v1253_v62, %v3440_v7  ;;  %v1247_v7 = vmul.f32 %v2750_v46, %v1207_v2  ;;  %v1177_v34 = vmul.f32 %v3487_v42, %v1169_v55  ;;  %v1103_v59 = vsel %vm1095_vm6, 1.0, %v2877_v8 }
 0x368   :  { %v1260_v30 = vmul.f32 %v1252_v19, %v1100_v21  ;;  %v1246_v16 = vmul.f32 %v2752_v48, %v1206_v36  ;;  %v1184_v21 = vadd.f32 -0.28449672, %v1176_v32  ;;  %v1240_v23 = vmul.f32 1.442695, %v1226_v35 }
 0x369   :  { %v3504_v37 = vpop.eup %2753  ;;  %v1269_v40 = vadd.f32 1.0, %v1261_v50  ;;  %v1255_v56 = vsub.f32 1.0, %v1247_v7  ;;  %v1185_v27 = vadd.f32 -0.28449672, %v1177_v34  ;;  %v1079_v54 = vmul.f32 0.5, %v3397_v22 }
 0x36a   :  { %v3507_v44 = vpop.eup %2755  ;;  %v1268_v61 = vadd.f32 1.0, %v1260_v30  ;;  %v1147_v39 = vmul.f32 1.0614054, %v3504_v37  ;;  %v1254_v31 = vsub.f32 1.0, %v1246_v16  ;;  %v1192_v17 = vmul.f32 %v3483_v53, %v1184_v21 }
 0x36b   :  { %v1146_v20 = vmul.f32 1.0614054, %v3507_v44  ;;  %v1277_v57 = vmul.f32 %v1269_v40, %v3436_v15  ;;  %v1263_v14 = vmul.f32 %v1255_v56, %v1103_v59  ;;  %v1193_v6 = vmul.f32 %v3487_v42, %v1185_v27 }
 0x36c   :  { %v1276_v49 = vmul.f32 %v1268_v61, %v3443_v3  ;;  %v1155_v9 = vadd.f32 -1.4531521, %v1147_v39  ;;  %v1262_v0 = vmul.f32 %v1254_v31, %v3480_v52  ;;  %v1078_v3 = vmul.f32 0.5, %v3401_v51 }
 0x36d   :  { %v1154_v60 = vadd.f32 -1.4531521, %v1146_v20  ;;  %v1200_v12 = vadd.f32 0.2548296, %v1192_v17  ;;  %v2758_v52 = vpop.eup %2757  ;;  %v1271_v38 = vadd.f32 1.0, %v1263_v14  ;;  %2761 = vpow2.f32 %v1242_v41 }
 0x36e   :  { %2554 = vmatprep.mubr.msk.f32.mxu1 %vm770_vm10, %v1276_v49  ;;  %v1163_v1 = vmul.f32 %v3504_v37, %v1155_v9  ;;  %v1270_v13 = vadd.f32 1.0, %v1262_v0  ;;  %v1201_v62 = vadd.f32 0.2548296, %v1193_v6  ;;  %v2760_v25 = vpop.eup %2759  ;;  %2763 = vpow2.f32 %v1240_v23 }
 0x36f   :  { %2555 = vmatmul.mubr.msk.f32.vlgmr.msra.gmra.mrb[8].mxu1 %vm770_vm10, %v1277_v57  ;;  %v1162_v15 = vmul.f32 %v3507_v44, %v1154_v60  ;;  %v1208_v46 = vmul.f32 %v3483_v53, %v1200_v12  ;;  %v1279_v10 = vmul.f32 %v1271_v38, %v1079_v54  ;;  %v1104_v2 = vsel %vm1096_vm7, 1.0, %v2877_v8 }
 0x370   :  { %v1171_v63 = vadd.f32 1.4214138, %v1163_v1  ;;  %v1278_v43 = vmul.f32 %v1270_v13, %v1078_v3  ;;  %v1209_v28 = vmul.f32 %v3487_v42, %v1201_v62  ;;  %v1105_v41 = vsel %vm1097_vm8, 1.0, %v2877_v8 }
 0x371   :  { %v1170_v19 = vadd.f32 1.4214138, %v1162_v15  ;;  %v1248_v50 = vmul.f32 %v2760_v25, %v1208_v46  ;;  %v1080_v61 = vmul.f32 0.5, %v3415_v18  ;;  %v1081_v34 = vmul.f32 0.5, %v3411_v24 }
 0x372   :  { %v1179_v48 = vmul.f32 %v3504_v37, %v1171_v63  ;;  %2557 = vmatprep.mubr.msk.f32.mxu1 %vm770_vm10, %v1278_v43  ;;  %v1249_v33 = vmul.f32 %v2758_v52, %v1209_v28  ;;  %vm1099_vm9 = vcmp.ge.f32.partialorder %v3462_v5, 0.0  ;;  %vm1098_vm11 = vcmp.ge.f32.partialorder %v3465_v45, 0.0  ;;  %v2382_v45 = vld [vmem:[%s3839_s9] ss:$0 sm:$0xff]  ;;  %s2878_s9 = smov 8  }
 0x373   :  { %v1178_v36 = vmul.f32 %v3507_v44, %v1170_v19  ;;  %2558 = vmatmul.mubr.msk.f32.gmra.mrb[10].mxu1 %vm770_vm10, %v1279_v10  ;;  %v1256_v35 = vsub.f32 1.0, %v1248_v50  ;;  %v1106_v17 = vsel %vm1098_vm11, 1.0, %v2877_v8  ;;  %v1082_v14 = vmul.f32 0.5, %v3457_v11 }
 0x374   :  { %v1187_v53 = vadd.f32 -0.28449672, %v1179_v48  ;;  %v1257_v42 = vsub.f32 1.0, %v1249_v33  ;;  %v1083_v6 = vmul.f32 0.5, %v3453_v4  ;;  %vm1293_vm6 = vcmp.gt.f32.partialorder %v3387_v58, 20.0 }
 0x375   :  { %v1186_v30 = vadd.f32 -0.28449672, %v1178_v36  ;;  %v1264_v40 = vmul.f32 %v1256_v35, %v1104_v2  ;;  %vm1294_vm7 = vcmp.gt.f32.partialorder %v3401_v51, 20.0  ;;  %vm1295_vm8 = vcmp.gt.f32.partialorder %v3397_v22, 20.0 }
 0x376   :  { %v1195_v55 = vmul.f32 %v3504_v37, %v1187_v53  ;;  %v1265_v16 = vmul.f32 %v1257_v42, %v1105_v41  ;;  %vm1296_vm11 = vcmp.gt.f32.partialorder %v3415_v18, 20.0 }
 0x377   :  { %v1194_v47 = vmul.f32 %v3507_v44, %v1186_v30  ;;  %v1272_v7 = vadd.f32 1.0, %v1264_v40  ;;  %v2762_v59 = vpop.eup %2761 }
 0x378   :  { %v1203_v32 = vadd.f32 0.2548296, %v1195_v55  ;;  %v1273_v39 = vadd.f32 1.0, %v1265_v16  ;;  %v2764_v49 = vpop.eup %2763 }
 0x379   :  { %v1202_v26 = vadd.f32 0.2548296, %v1194_v47  ;;  %v1280_v21 = vmul.f32 %v1272_v7, %v1080_v61 }
 0x37a   :  { %v1211_v31 = vmul.f32 %v3504_v37, %v1203_v32  ;;  %v1281_v56 = vmul.f32 %v1273_v39, %v1081_v34  ;;  %v1107_v37 = vsel %vm1099_vm9, 1.0, %v2877_v8  ;;  %vm1297_vm9 = vcmp.gt.f32.partialorder %v3411_v24, 20.0 }
 0x37b   :  { %v1210_v20 = vmul.f32 %v3507_v44, %v1202_v26  ;;  %2560 = vmatprep.mubr.msk.f32.mxu1 %vm770_vm10, %v1280_v21 }
 0x37c   :  { %v1251_v27 = vmul.f32 %v2762_v59, %v1211_v31  ;;  %2561 = vmatmul.mubr.msk.f32.gmra.mrb[12].mxu1 %vm770_vm10, %v1281_v56 }
 0x37d   :  { %v1250_v9 = vmul.f32 %v2764_v49, %v1210_v20 }
 0x37e   :  { %v1259_v57 = vsub.f32 1.0, %v1251_v27 }
 0x37f   :  { %v1258_v0 = vsub.f32 1.0, %v1250_v9 }
 0x380   :  { %v1267_v60 = vmul.f32 %v1259_v57, %v1107_v37 }
 0x381   :  { %v1266_v44 = vmul.f32 %v1258_v0, %v1106_v17 }
 0x382   :  { %v1275_v23 = vadd.f32 1.0, %v1267_v60 }
 0x383   :  { %v1274_v5 = vadd.f32 1.0, %v1266_v44 }
 0x384   :  { %v1283_v3 = vmul.f32 %v1275_v23, %v1083_v6 }
 0x385   :  { %v1282_v1 = vmul.f32 %v1274_v5, %v1082_v14 }
 0x387   :  { %2563 = vmatprep.mubr.msk.f32.mxu1 %vm770_vm10, %v1282_v1 }
 0x388   :  { %2564 = vmatmul.mubr.msk.f32.gmra.mrb[14].mxu1 %vm770_vm10, %v1283_v3 }
 0x442   :  { %v2556_v13 = vpop.f32.mrb[8].mxu1 }
 0x443   :  { %v3555_v8 = vadd.f32 %v2556_v13, %v2382_v45  ;;  %v1446_v12 = vpop.f32.mrb[9].mxu1 }
 0x444   :  { %v1447_v15 = vadd.f32 %v2382_v45, %v1446_v12 }
 0x445   :  { %v1486_v52 = vmin.f32 %v3555_v8, 20.0  ;;  %vm1494_vm13 = vcmp.gt.f32.partialorder %v3555_v8, 20.0 }
 0x446   :  { %v1485_v54 = vmin.f32 %v1447_v15, 20.0  ;;  %v2559_v62 = vpop.f32.mrb[10].mxu1  ;;  %vm1493_vm12 = vcmp.gt.f32.partialorder %v1447_v15, 20.0 }
 0x447   :  { %v1503_v38 = vmul.f32 1.442695, %v1486_v52  ;;  %v3558_v25 = vadd.f32 %v2559_v62, %v2382_v45  ;;  %v1456_v43 = vpop.f32.mrb[11].mxu1 }
 0x448   :  { %v1501_v63 = vmul.f32 1.442695, %v1485_v54  ;;  %v1457_v46 = vadd.f32 %v2382_v45, %v1456_v43 }
 0x449   :  { %2765 = vpow2.f32 %v1503_v38  ;;  %v1488_v19 = vmin.f32 %v3558_v25, 20.0  ;;  %vm1496_vm15 = vcmp.gt.f32.partialorder %v3558_v25, 20.0 }
 0x44a   :  { %2767 = vpow2.f32 %v1501_v63  ;;  %v1487_v10 = vmin.f32 %v1457_v46, 20.0  ;;  %vm1495_vm14 = vcmp.gt.f32.partialorder %v1457_v46, 20.0 }
 0x44b   :  { %v1507_v28 = vmul.f32 1.442695, %v1488_v19 }
 0x44c   :  { %v1505_v48 = vmul.f32 1.442695, %v1487_v10 }
 0x44d   :  { %2769 = vpow2.f32 %v1507_v28 }
 0x44e   :  { %2771 = vpow2.f32 %v1505_v48 }
 0x44f   :  { %v2562_v50 = vpop.f32.mrb[12].mxu1 }
 0x450   :  { %v3561_v36 = vadd.f32 %v2562_v50, %v2382_v45  ;;  %v1466_v33 = vpop.f32.mrb[13].mxu1  ;;  %v1758_v50 = vld [vmem:[%s3840_s5] sm:$0xff]  ;;  %s2879_s5 = smov 120  }
 0x451   :  { %v3563_v35 = vadd.f32 %v2382_v45, %v1466_v33  ;;  %2566 = vmatprep.subr.mxu0 %v1758_v50 }
 0x452   :  { %v1490_v42 = vmin.f32 %v3561_v36, 20.0  ;;  %vm1498_vm0 = vcmp.gt.f32.partialorder %v3561_v36, 20.0  ;;  %2567 = vmatpush3.msra.mxu0 %v1758_v50 }
 0x453   :  { %v2766_v53 = vpop.eup %2765  ;;  %v1489_v55 = vmin.f32 %v3563_v35, 20.0  ;;  %vm1497_vm1 = vcmp.gt.f32.partialorder %v3563_v35, 20.0 }
 0x454   :  { %v2768_v30 = vpop.eup %2767  ;;  %v1518_v2 = vadd.f32 1.0, %v2766_v53  ;;  %v1511_v41 = vmul.f32 1.442695, %v1490_v42  ;;  %v1285_v53 = vmin.f32 %v3387_v58, 20.0  ;;  %v1287_v42 = vmin.f32 %v3397_v22, 20.0 }
 0x455   :  { %v1517_v40 = vadd.f32 1.0, %v2768_v30  ;;  %v1509_v47 = vmul.f32 1.442695, %v1489_v55 }
 0x456   :  { %2773 = vlog2.f32 %v1518_v2  ;;  %v1302_v30 = vmul.f32 1.442695, %v1285_v53  ;;  %v1306_v55 = vmul.f32 1.442695, %v1287_v42 }
 0x457   :  { %2775 = vlog2.f32 %v1517_v40  ;;  %v2770_v16 = vpop.eup %2769  ;;  %v1289_v40 = vmin.f32 %v3411_v24, 20.0 }
 0x458   :  { %2777 = vpow2.f32 %v1511_v41  ;;  %v2772_v32 = vpop.eup %2771  ;;  %v1520_v61 = vadd.f32 1.0, %v2770_v16  ;;  %v1288_v41 = vmin.f32 %v3415_v18, 20.0 }
 0x459   :  { %2779 = vpow2.f32 %v1509_v47  ;;  %v1519_v7 = vadd.f32 1.0, %v2772_v32  ;;  %v1310_v16 = vmul.f32 1.442695, %v1289_v40 }
 0x45a   :  { %2781 = vlog2.f32 %v1520_v61  ;;  %v1308_v32 = vmul.f32 1.442695, %v1288_v41 }
 0x45b   :  { %v2565_v26 = vpop.f32.mrb[14].mxu1  ;;  %2783 = vlog2.f32 %v1519_v7 }
 0x45c   :  { %v1482_v34 = vadd.f32 %v2565_v26, %v2382_v45  ;;  %v1476_v39 = vpop.f32.mrb[15].mxu1 }
 0x45d   :  { %v1477_v31 = vadd.f32 %v2382_v45, %v1476_v39  ;;  %v1291_v39 = vmin.f32 %v3453_v4, 20.0 }
 0x45e   :  { %v1492_v59 = vmin.f32 %v1482_v34, 20.0  ;;  %vm1500_vm2 = vcmp.gt.f32.partialorder %v1482_v34, 20.0 }
 0x45f   :  { %v1491_v21 = vmin.f32 %v1477_v31, 20.0  ;;  %vm1499_vm3 = vcmp.gt.f32.partialorder %v1477_v31, 20.0 }
 0x460   :  { %v2774_v20 = vpop.eup %2773  ;;  %v1515_v49 = vmul.f32 1.442695, %v1492_v59 }
 0x461   :  { %v2776_v56 = vpop.eup %2775  ;;  %v1513_v27 = vmul.f32 1.442695, %v1491_v21  ;;  %v1528_v44 = vmul.f32 0.6931472, %v2774_v20 }
 0x462   :  { %v2778_v9 = vpop.eup %2777  ;;  %2785 = vpow2.f32 %v1515_v49  ;;  %v1526_v57 = vmul.f32 0.6931472, %v2776_v56  ;;  %v1314_v49 = vmul.f32 1.442695, %v1291_v39 }
 0x463   :  { %v2780_v0 = vpop.eup %2779  ;;  %v1522_v37 = vadd.f32 1.0, %v2778_v9  ;;  %2787 = vpow2.f32 %v1513_v27  ;;  %v3573_v6 = vsel %vm1494_vm13, %v3555_v8, %v1528_v44  ;;  %vm1299_vm13 = vcmp.gt.f32.partialorder %v3453_v4, 20.0 }
 0x464   :  { %v1521_v17 = vadd.f32 1.0, %v2780_v0  ;;  %v3567_v60 = vsel %vm1493_vm12, %v1447_v15, %v1526_v57  ;;  %v2782_v23 = vpop.eup %2781  ;;  %vm1298_vm12 = vcmp.gt.f32.partialorder %v3457_v11, 20.0 }
 0x465   :  { %1557 = vrot.lane.b32.xlu0 %v3567_v60, %s2878_s9  ;;  %2789 = vlog2.f32 %v1522_v37  ;;  %v2784_v14 = vpop.eup %2783  ;;  %v1532_v3 = vmul.f32 0.6931472, %v2782_v23 }
 0x466   :  { %2791 = vlog2.f32 %v1521_v17  ;;  %v1530_v5 = vmul.f32 0.6931472, %v2784_v14 }
 0x467   :  { %v3583_v15 = vsel %vm1496_vm15, %v3558_v25, %v1532_v3 }
 0x468   :  { %v3575_v1 = vsel %vm1495_vm14, %v1457_v46, %v1530_v5 }
 0x469   :  { %1559 = vrot.lane.b32.xlu0 %v3573_v6, %s2878_s9  ;;  %1561 = vrot.lane.b32.xlu1 %v3575_v1, %s2878_s9 }
 0x46c   :  { %v2786_v45 = vpop.eup %2785 }
 0x46d   :  { %v2788_v13 = vpop.eup %2787  ;;  %v1524_v12 = vadd.f32 1.0, %v2786_v45  ;;  %1563 = vrot.lane.b32.xlu1 %v3583_v15, %s2878_s9 }
 0x46e   :  { %v1523_v52 = vadd.f32 1.0, %v2788_v13 }
 0x46f   :  { %v2790_v8 = vpop.eup %2789  ;;  %2793 = vlog2.f32 %v1524_v12 }
 0x470   :  { %v2792_v54 = vpop.eup %2791  ;;  %v1536_v38 = vmul.f32 0.6931472, %v2790_v8  ;;  %2795 = vlog2.f32 %v1523_v52 }
 0x471   :  { %v1534_v62 = vmul.f32 0.6931472, %v2792_v54 }
 0x472   :  { %v3590_v63 = vsel %vm1498_vm0, %v3561_v36, %v1536_v38  ;;  %v1284_v36 = vmin.f32 %v3390_v29, 20.0 }
 0x473   :  { %v3593_v25 = vsel %vm1497_vm1, %v3563_v35, %v1534_v62  ;;  %1567 = vrot.lane.b32.xlu1 %v3590_v63, %s2878_s9  ;;  %v1286_v35 = vmin.f32 %v3401_v51, 20.0 }
 0x474   :  { %1565 = vrot.lane.b32.xlu0 %v3593_v25, %s2878_s9  ;;  %v1300_v33 = vmul.f32 1.442695, %v1284_v36 }
 0x475   :  { %v1304_v2 = vmul.f32 1.442695, %v1286_v35 }
 0x476   :  { %2797 = vpow2.f32 %v1300_v33 }
 0x477   :  { %2799 = vpow2.f32 %v1302_v30 }
 0x478   :  { %2801 = vpow2.f32 %v1304_v2 }
 0x479   :  { %v2794_v43 = vpop.eup %2793  ;;  %2803 = vpow2.f32 %v1306_v55 }
 0x47a   :  { %v2796_v46 = vpop.eup %2795  ;;  %v1540_v19 = vmul.f32 0.6931472, %v2794_v43  ;;  %2805 = vpow2.f32 %v1310_v16 }
 0x47b   :  { %v1538_v10 = vmul.f32 0.6931472, %v2796_v46  ;;  %2807 = vpow2.f32 %v1308_v32 }
 0x47c   :  { %v3599_v28 = vsel %vm1500_vm2, %v1482_v34, %v1540_v19  ;;  %v1290_v34 = vmin.f32 %v3457_v11, 20.0 }
 0x47d   :  { %v3601_v48 = vsel %vm1499_vm3, %v1477_v31, %v1538_v10  ;;  %1571 = vrot.lane.b32.xlu1 %v3599_v28, %s2878_s9 }
 0x47e   :  { %1569 = vrot.lane.b32.xlu0 %v3601_v48, %s2878_s9  ;;  %v1312_v20 = vmul.f32 1.442695, %v1290_v34 }
 0x480   :  { %v2798_v47 = vpop.eup %2797 }
 0x481   :  { %v1316_v61 = vadd.f32 1.0, %v2798_v47  ;;  %v2800_v7 = vpop.eup %2799 }
 0x482   :  { %v2802_v26 = vpop.eup %2801  ;;  %v1317_v31 = vadd.f32 1.0, %v2800_v7 }
 0x483   :  { %2809 = vlog2.f32 %v1316_v61  ;;  %v1318_v59 = vadd.f32 1.0, %v2802_v26  ;;  %v2804_v21 = vpop.eup %2803 }
 0x484   :  { %2811 = vlog2.f32 %v1317_v31  ;;  %v1319_v56 = vadd.f32 1.0, %v2804_v21  ;;  %v2806_v27 = vpop.eup %2805 }
 0x485   :  { %2813 = vlog2.f32 %v1318_v59  ;;  %v2808_v9 = vpop.eup %2807  ;;  %v1321_v0 = vadd.f32 1.0, %v2806_v27 }
 0x486   :  { %2815 = vpow2.f32 %v1312_v20  ;;  %v1320_v37 = vadd.f32 1.0, %v2808_v9 }
 0x487   :  { %2817 = vpow2.f32 %v1314_v49 }
 0x488   :  { %2819 = vlog2.f32 %v1319_v56 }
 0x489   :  { %2821 = vlog2.f32 %v1321_v0 }
 0x48a   :  { %2823 = vlog2.f32 %v1320_v37 }
 0x48d   :  { %v2810_v57 = vpop.eup %2809 }
 0x48e   :  { %v1325_v17 = vmul.f32 0.6931472, %v2810_v57  ;;  %v2812_v44 = vpop.eup %2811 }
 0x48f   :  { %v2814_v23 = vpop.eup %2813  ;;  %v1327_v13 = vmul.f32 0.6931472, %v2812_v44 }
 0x490   :  { %v2816_v14 = vpop.eup %2815  ;;  %v1340_v3 = vsel %vm1292_vm4, %v3390_v29, %v1325_v17  ;;  %v1329_v52 = vmul.f32 0.6931472, %v2814_v23 }
 0x491   :  { %v2818_v5 = vpop.eup %2817  ;;  %v1322_v54 = vadd.f32 1.0, %v2816_v14  ;;  %v1341_v46 = vsel %vm1293_vm6, %v3387_v58, %v1327_v13 }
 0x492   :  { %v2820_v8 = vpop.eup %2819  ;;  %v1323_v62 = vadd.f32 1.0, %v2818_v5  ;;  %v1342_v29 = vsel %vm1294_vm7, %v3401_v51, %v1329_v52 }
 0x493   :  { %v1331_v36 = vmul.f32 0.6931472, %v2820_v8  ;;  %2825 = vlog2.f32 %v1322_v54  ;;  %v2822_v35 = vpop.eup %2821 }
 0x494   :  { %2827 = vlog2.f32 %v1323_v62  ;;  %v2824_v2 = vpop.eup %2823  ;;  %v1335_v61 = vmul.f32 0.6931472, %v2822_v35 }
 0x495   :  { %v1343_v40 = vsel %vm1295_vm8, %v3397_v22, %v1331_v36  ;;  %v1333_v26 = vmul.f32 0.6931472, %v2824_v2 }
 0x496   :  { %v1345_v22 = vsel %vm1297_vm9, %v3411_v24, %v1335_v61 }
 0x497   :  { %v1344_v57 = vsel %vm1296_vm11, %v3415_v18, %v1333_v26 }
 0x49d   :  { %v2826_v17 = vpop.eup %2825 }
 0x49e   :  { %v2828_v5 = vpop.eup %2827 }
 0x4d7   :  { %v1558_v45 = vpop.permute.xlu0 %1557 }
 0x4d8   :  { %v1581_v12 = vsub.f32 %v1340_v3, %v1558_v45 }
 0x4da   :  { %v1590_v38 = vsel %vm1589_vm5, %v1581_v12, 0.0 }
 0x4db   :  { %v1591_v43 = vrot.slane %v1590_v38, 4  ;;  %v1560_v19 = vpop.permute.xlu0 %1559  ;;  %v1562_v10 = vpop.permute.xlu1 %1561 }
 0x4dc   :  { %v3625_v50 = vsub.f32 %v1341_v46, %v1560_v19  ;;  %v3627_v53 = vsub.f32 %v1342_v29, %v1562_v10  ;;  %v1339_v10 = vmul.f32 0.6931472, %v2828_v5 }
 0x4dd   :  { %v1592_v33 = vadd.f32 %v1591_v43, %v1590_v38  ;;  %v1337_v43 = vmul.f32 0.6931472, %v2826_v17 }
 0x4de   :  { %v1597_v30 = vsel %vm1589_vm5, %v3625_v50, 0.0  ;;  %v1604_v58 = vsel %vm1589_vm5, %v3627_v53, 0.0 }
 0x4df   :  { %v1593_v42 = vrot.slane %v1592_v33, 2  ;;  %v1598_v55 = vrot.slane %v1597_v30, 4  ;;  %v1605_v51 = vrot.slane %v1604_v58, 4  ;;  %v1564_v41 = vpop.permute.xlu1 %1563 }
 0x4e0   :  { %v3635_v32 = vsub.f32 %v1343_v40, %v1564_v41 }
 0x4e1   :  { %v1594_v47 = vadd.f32 %v1593_v42, %v1592_v33  ;;  %v1599_v16 = vadd.f32 %v1598_v55, %v1597_v30  ;;  %v1606_v7 = vadd.f32 %v1605_v51, %v1604_v58 }
 0x4e2   :  { %v1611_v31 = vsel %vm1589_vm5, %v3635_v32, 0.0 }
 0x4e3   :  { %v1595_v34 = vrot.slane %v1594_v47, 1  ;;  %v1600_v39 = vrot.slane %v1599_v16, 2  ;;  %v1607_v59 = vrot.slane %v1606_v7, 2  ;;  %v1612_v21 = vrot.slane %v1611_v31, 4 }
 0x4e5   :  { %v1596_v20 = vadd.f32 %v1595_v34, %v1594_v47  ;;  %v1601_v49 = vadd.f32 %v1600_v39, %v1599_v16  ;;  %v1568_v56 = vpop.permute.xlu1 %1567  ;;  %v1608_v27 = vadd.f32 %v1607_v59, %v1606_v7  ;;  %v1613_v9 = vadd.f32 %v1612_v21, %v1611_v31 }
 0x4e6   :  { %v1566_v0 = vpop.permute.xlu0 %1565  ;;  %v3643_v37 = vsub.f32 %v1345_v22, %v1568_v56  ;;  %v1346_v47 = vsel %vm1298_vm12, %v3457_v11, %v1337_v43  ;;  %v1347_v16 = vsel %vm1299_vm13, %v3453_v4, %v1339_v10 }
 0x4e7   :  { %v1646_v44 = vmul.f32 0.125, %v1596_v20  ;;  %v1602_v23 = vrot.slane %v1601_v49, 1  ;;  %v3645_v14 = vsub.f32 %v1344_v57, %v1566_v0  ;;  %v1609_v3 = vrot.slane %v1608_v27, 1 }
 0x4e8   :  { %v1614_v45 = vrot.slane %v1613_v9, 2  ;;  %v1625_v13 = vsel %vm1589_vm5, %v3643_v37, 0.0 }
 0x4e9   :  { %v3649_v24 = vsub.f32 %v1581_v12, %v1646_v44  ;;  %v1603_v52 = vadd.f32 %v1602_v23, %v1601_v49  ;;  %v1618_v18 = vsel %vm1589_vm5, %v3645_v14, 0.0  ;;  %v1626_v8 = vrot.slane %v1625_v13, 4 }
 0x4ea   :  { %v1610_v54 = vadd.f32 %v1609_v3, %v1608_v27  ;;  %v1615_v38 = vadd.f32 %v1614_v45, %v1613_v9  ;;  %v1619_v62 = vrot.slane %v1618_v18, 4 }
 0x4eb   :  { %v1662_v46 = vmul.f32 %v3649_v24, %v3649_v24  ;;  %v1647_v19 = vmul.f32 0.125, %v1603_v52  ;;  %v1627_v29 = vadd.f32 %v1626_v8, %v1625_v13 }
 0x4ec   :  { %v1648_v36 = vmul.f32 0.125, %v1610_v54  ;;  %v1616_v33 = vrot.slane %v1615_v38, 1  ;;  %v1620_v35 = vadd.f32 %v1619_v62, %v1618_v18 }
 0x4ed   :  { %v1670_v12 = vsel %vm1589_vm5, %v1662_v46, 0.0  ;;  %v3658_v30 = vsub.f32 %v3625_v50, %v1647_v19  ;;  %v1628_v2 = vrot.slane %v1627_v29, 2 }
 0x4ee   :  { %v1671_v42 = vrot.slane %v1670_v12, 4  ;;  %v3662_v58 = vsub.f32 %v3627_v53, %v1648_v36  ;;  %v1617_v55 = vadd.f32 %v1616_v33, %v1615_v38  ;;  %v1621_v51 = vrot.slane %v1620_v35, 2 }
 0x4ef   :  { %v1663_v40 = vmul.f32 %v3658_v30, %v3658_v30  ;;  %v1629_v41 = vadd.f32 %v1628_v2, %v1627_v29  ;;  %v1572_v61 = vpop.permute.xlu1 %1571 }
 0x4f0   :  { %v1672_v50 = vadd.f32 %v1671_v42, %v1670_v12  ;;  %v1664_v7 = vmul.f32 %v3662_v58, %v3662_v58  ;;  %v1649_v26 = vmul.f32 0.125, %v1617_v55  ;;  %v1622_v34 = vadd.f32 %v1621_v51, %v1620_v35  ;;  %v1570_v39 = vpop.permute.xlu0 %1569 }
 0x4f1   :  { %v1677_v53 = vsel %vm1589_vm5, %v1663_v40, 0.0  ;;  %v1630_v31 = vrot.slane %v1629_v41, 1  ;;  %v3671_v59 = vsub.f32 %v1346_v47, %v1570_v39  ;;  %v3673_v21 = vsub.f32 %v1347_v16, %v1572_v61 }
 0x4f2   :  { %v1673_v20 = vrot.slane %v1672_v50, 2  ;;  %v1684_v11 = vsel %vm1589_vm5, %v1664_v7, 0.0  ;;  %v1678_v49 = vrot.slane %v1677_v53, 4  ;;  %v3677_v4 = vsub.f32 %v3635_v32, %v1649_v26 }
 0x4f3   :  { %v1685_v22 = vrot.slane %v1684_v11, 4  ;;  %v1623_v56 = vrot.slane %v1622_v34, 1  ;;  %v1631_v27 = vadd.f32 %v1630_v31, %v1629_v41  ;;  %v1632_v9 = vsel %vm1589_vm5, %v3671_v59, 0.0 }
 0x4f4   :  { %v1674_v57 = vadd.f32 %v1673_v20, %v1672_v50  ;;  %v1679_v0 = vadd.f32 %v1678_v49, %v1677_v53  ;;  %v1665_v17 = vmul.f32 %v3677_v4, %v3677_v4  ;;  %v1633_v44 = vrot.slane %v1632_v9, 4 }
 0x4f5   :  { %v1686_v23 = vadd.f32 %v1685_v22, %v1684_v11  ;;  %v1624_v5 = vadd.f32 %v1623_v56, %v1622_v34  ;;  %v1651_v3 = vmul.f32 0.125, %v1631_v27  ;;  %v1639_v45 = vsel %vm1589_vm5, %v3673_v21, 0.0 }
 0x4f6   :  { %v1675_v32 = vrot.slane %v1674_v57, 1  ;;  %v1680_v13 = vrot.slane %v1679_v0, 2  ;;  %v1691_v52 = vsel %vm1589_vm5, %v1665_v17, 0.0  ;;  %v1634_v18 = vadd.f32 %v1633_v44, %v1632_v9 }
 0x4f7   :  { %v1687_v8 = vrot.slane %v1686_v23, 2  ;;  %v1692_v54 = vrot.slane %v1691_v52, 4  ;;  %v1650_v38 = vmul.f32 0.125, %v1624_v5  ;;  %v3687_v62 = vsub.f32 %v3643_v37, %v1651_v3 }
 0x4f8   :  { %v1676_v43 = vadd.f32 %v1675_v32, %v1674_v57  ;;  %v1681_v46 = vadd.f32 %v1680_v13, %v1679_v0  ;;  %v1635_v19 = vrot.slane %v1634_v18, 2  ;;  %v1640_v29 = vrot.slane %v1639_v45, 4 }
 0x4f9   :  { %v1688_v10 = vadd.f32 %v1687_v8, %v1686_v23  ;;  %v1693_v36 = vadd.f32 %v1692_v54, %v1691_v52  ;;  %v3690_v33 = vsub.f32 %v3645_v14, %v1650_v38  ;;  %v1667_v35 = vmul.f32 %v3687_v62, %v3687_v62 }
 0x4fa   :  { %v1726_v12 = vmul.f32 0.125, %v1676_v43  ;;  %v1682_v2 = vrot.slane %v1681_v46, 1  ;;  %v1636_v42 = vadd.f32 %v1635_v19, %v1634_v18  ;;  %v1641_v55 = vadd.f32 %v1640_v29, %v1639_v45 }
 0x4fb   :  { %v1689_v51 = vrot.slane %v1688_v10, 1  ;;  %v1694_v40 = vrot.slane %v1693_v36, 2  ;;  %v1666_v37 = vmul.f32 %v3690_v33, %v3690_v33  ;;  %v1705_v41 = vsel %vm1589_vm5, %v1667_v35, 0.0 }
 0x4fc   :  { %v1734_v47 = vadd.f32 1e-05, %v1726_v12  ;;  %v1683_v16 = vadd.f32 %v1682_v2, %v1681_v46  ;;  %v1706_v61 = vrot.slane %v1705_v41, 4  ;;  %v1637_v50 = vrot.slane %v1636_v42, 1 }
 0x4fd   :  { %v1690_v14 = vadd.f32 %v1689_v51, %v1688_v10  ;;  %v1695_v7 = vadd.f32 %v1694_v40, %v1693_v36  ;;  %v1698_v26 = vsel %vm1589_vm5, %v1666_v37, 0.0  ;;  %v1642_v34 = vrot.slane %v1641_v55, 2 }
 0x4fe   :  { %2829 = vrsqrt.f32 %v1734_v47  ;;  %v1727_v39 = vmul.f32 0.125, %v1683_v16  ;;  %v1699_v53 = vrot.slane %v1698_v26, 4  ;;  %v1707_v31 = vadd.f32 %v1706_v61, %v1705_v41 }
 0x4ff   :  { %v1728_v20 = vmul.f32 0.125, %v1690_v14  ;;  %v1696_v11 = vrot.slane %v1695_v7, 1  ;;  %v1638_v49 = vadd.f32 %v1637_v50, %v1636_v42  ;;  %v1643_v22 = vadd.f32 %v1642_v34, %v1641_v55 }
 0x500   :  { %v1735_v56 = vadd.f32 1e-05, %v1727_v39  ;;  %v1700_v27 = vadd.f32 %v1699_v53, %v1698_v26  ;;  %v1708_v9 = vrot.slane %v1707_v31, 2 }
 0x501   :  { %v1736_v57 = vadd.f32 1e-05, %v1728_v20  ;;  %v1697_v0 = vadd.f32 %v1696_v11, %v1695_v7  ;;  %v1652_v17 = vmul.f32 0.125, %v1638_v49  ;;  %v1644_v44 = vrot.slane %v1643_v22, 1 }
 0x502   :  { %2831 = vrsqrt.f32 %v1735_v56  ;;  %v1701_v23 = vrot.slane %v1700_v27, 2  ;;  %v1709_v5 = vadd.f32 %v1708_v9, %v1707_v31 }
 0x503   :  { %2833 = vrsqrt.f32 %v1736_v57  ;;  %v1729_v3 = vmul.f32 0.125, %v1697_v0  ;;  %v1660_v45 = vsub.f32 %v3671_v59, %v1652_v17  ;;  %v1645_v32 = vadd.f32 %v1644_v44, %v1643_v22 }
 0x504   :  { %v1702_v13 = vadd.f32 %v1701_v23, %v1700_v27  ;;  %v1710_v52 = vrot.slane %v1709_v5, 1 }
 0x505   :  { %v1737_v18 = vadd.f32 1e-05, %v1729_v3  ;;  %v1668_v8 = vmul.f32 %v1660_v45, %v1660_v45  ;;  %v1653_v54 = vmul.f32 0.125, %v1645_v32 }
 0x506   :  { %v1703_v38 = vrot.slane %v1702_v13, 1  ;;  %v1711_v43 = vadd.f32 %v1710_v52, %v1709_v5  ;;  %v2409_v52 = vld [vmem:[%s3841_s11 + $0x10] sm:$0xff] }
 0x507   :  { %2835 = vrsqrt.f32 %v1737_v18  ;;  %v1712_v46 = vsel %vm1589_vm5, %v1668_v8, 0.0  ;;  %v1661_v19 = vsub.f32 %v3673_v21, %v1653_v54  ;;  %v3733_v18 = vld [vmem:[%s3841_s11] sm:$0xff]  ;;  %2594 = vmatprep.subr.mxu0 %v2409_v52 }
 0x508   :  { %v2830_v29 = vpop.eup %2829  ;;  %v1704_v10 = vadd.f32 %v1703_v38, %v1702_v13  ;;  %v1731_v36 = vmul.f32 0.125, %v1711_v43  ;;  %v1713_v35 = vrot.slane %v1712_v46, 4  ;;  %v2400_v13 = vld [vmem:[%s3841_s11 + $0x8] sm:$0xff]  ;;  %v2391_v8 = vld [vmem:[%s3842_s10] ss:$0 sm:$0xff] }
 0x509   :  { %v1669_v12 = vmul.f32 %v1661_v19, %v1661_v19  ;;  %v1750_v59 = vmul.f32 %v2830_v29, %v3649_v24  ;;  %2580 = vmatprep.subr.mxu1 %v2400_v13 }
 0x50a   :  { %v1730_v2 = vmul.f32 0.125, %v1704_v10  ;;  %v1739_v42 = vadd.f32 1e-05, %v1731_v36  ;;  %v1714_v55 = vadd.f32 %v1713_v35, %v1712_v46  ;;  %2581 = vmatpush3.msra.mxu1 %v2400_v13 }
 0x50b   :  { %v1719_v51 = vsel %vm1589_vm5, %v1669_v12, 0.0  ;;  %1774 = vrot.lane.b32.xlu0 %v1750_v59, %s2879_s5  ;;  %2608 = vmatprep.subr.mxu1 %v3733_v18 }
 0x50c   :  { %v2832_v40 = vpop.eup %2831  ;;  %v1738_v37 = vadd.f32 1e-05, %v1730_v2  ;;  %2837 = vrsqrt.f32 %v1739_v42  ;;  %v1715_v41 = vrot.slane %v1714_v55, 2  ;;  %v1720_v21 = vrot.slane %v1719_v51, 4 }
 0x50d   :  { %v2834_v47 = vpop.eup %2833  ;;  %v1751_v16 = vmul.f32 %v2832_v40, %v3658_v30 }
 0x50e   :  { %2839 = vrsqrt.f32 %v1738_v37  ;;  %v1716_v61 = vadd.f32 %v1715_v41, %v1714_v55  ;;  %v1721_v50 = vadd.f32 %v1720_v21, %v1719_v51  ;;  %v1752_v24 = vmul.f32 %v2834_v47, %v3662_v58 }
 0x50f   :  { %1776 = vrot.lane.b32.xlu1 %v1751_v16, %s2879_s5 }
 0x510   :  { %v1717_v14 = vrot.slane %v1716_v61, 1  ;;  %v1722_v7 = vrot.slane %v1721_v50, 2  ;;  %1778 = vrot.lane.b32.xlu0 %v1752_v24, %s2879_s5 }
 0x511   :  { %v2836_v26 = vpop.eup %2835 }
 0x512   :  { %v1718_v34 = vadd.f32 %v1717_v14, %v1716_v61  ;;  %v1723_v39 = vadd.f32 %v1722_v7, %v1721_v50  ;;  %v1753_v53 = vmul.f32 %v2836_v26, %v3677_v4 }
 0x514   :  { %v1732_v31 = vmul.f32 0.125, %v1718_v34  ;;  %v1724_v20 = vrot.slane %v1723_v39, 1  ;;  %1780 = vrot.lane.b32.xlu1 %v1753_v53, %s2879_s5 }
 0x516   :  { %v2838_v30 = vpop.eup %2837  ;;  %v1740_v11 = vadd.f32 1e-05, %v1732_v31  ;;  %v1725_v49 = vadd.f32 %v1724_v20, %v1723_v39 }
 0x517   :  { %v1755_v58 = vmul.f32 %v2838_v30, %v3687_v62 }
 0x518   :  { %v2840_v22 = vpop.eup %2839  ;;  %2841 = vrsqrt.f32 %v1740_v11  ;;  %v1733_v56 = vmul.f32 0.125, %v1725_v49 }
 0x519   :  { %v1754_v27 = vmul.f32 %v2840_v22, %v3690_v33  ;;  %1784 = vrot.lane.b32.xlu1 %v1755_v58, %s2879_s5 }
 0x51a   :  { %v1741_v9 = vadd.f32 1e-05, %v1733_v56 }
 0x51b   :  { %1782 = vrot.lane.b32.xlu0 %v1754_v27, %s2879_s5 }
 0x51c   :  { %2843 = vrsqrt.f32 %v1741_v9 }
 0x522   :  { %v2842_v4 = vpop.eup %2841 }
 0x523   :  { %v1756_v57 = vmul.f32 %v2842_v4, %v1660_v45 }
 0x525   :  { %1786 = vrot.lane.b32.xlu0 %v1756_v57, %s2879_s5 }
 0x526   :  { %v2844_v0 = vpop.eup %2843 }
 0x527   :  { %v1757_v17 = vmul.f32 %v2844_v0, %v1661_v19 }
 0x529   :  { %1788 = vrot.lane.b32.xlu1 %v1757_v17, %s2879_s5 }
 0x57d   :  { %v1775_v62 = vpop.permute.xlu0 %1774 }
 0x57e   :  { %2568 = vmatprep.mubr.msk.f32.mxu0 %vm770_vm10, %v1775_v62 }
 0x581   :  { %v1777_v44 = vpop.permute.xlu1 %1776 }
 0x582   :  { %v1779_v23 = vpop.permute.xlu0 %1778  ;;  %2569 = vmatmul.mubr.msk.f32.vlgmr.msra.gmra.mrb[16].mxu0 %vm770_vm10, %v1777_v44 }
 0x583   :  { %2571 = vmatprep.mubr.msk.f32.mxu0 %vm770_vm10, %v1779_v23  ;;  %2595 = vmatpush3.msra.mxu0 %v2409_v52 }
 0x586   :  { %v1781_v33 = vpop.permute.xlu1 %1780 }
 0x587   :  { %2572 = vmatmul.mubr.msk.f32.gmra.mrb[18].mxu0 %vm770_vm10, %v1781_v33 }
 0x58b   :  { %v1785_v5 = vpop.permute.xlu1 %1784 }
 0x58d   :  { %v1783_v3 = vpop.permute.xlu0 %1782 }
 0x58e   :  { %2574 = vmatprep.mubr.msk.f32.mxu0 %vm770_vm10, %v1783_v3 }
 0x58f   :  { %2575 = vmatmul.mubr.msk.f32.gmra.mrb[20].mxu0 %vm770_vm10, %v1785_v5 }
 0x597   :  { %v1787_v45 = vpop.permute.xlu0 %1786 }
 0x598   :  { %2577 = vmatprep.mubr.msk.f32.mxu0 %vm770_vm10, %v1787_v45 }
 0x59b   :  { %v1789_v32 = vpop.permute.xlu1 %1788 }
 0x59c   :  { %2578 = vmatmul.mubr.msk.f32.gmra.mrb[22].mxu0 %vm770_vm10, %v1789_v32 }
 0x655   :  { %v2570_v54 = vpop.f32.mrb[16].mxu0 }
 0x656   :  { %v3739_v38 = vadd.f32 %v2570_v54, %v2391_v8  ;;  %v1872_v43 = vpop.f32.mrb[17].mxu0 }
 0x657   :  { %v1873_v46 = vadd.f32 %v2391_v8, %v1872_v43 }
 0x658   :  { %v1912_v19 = vmin.f32 %v3739_v38, 20.0  ;;  %vm1920_vm15 = vcmp.gt.f32.partialorder %v3739_v38, 20.0 }
 0x659   :  { %v1911_v29 = vmin.f32 %v1873_v46, 20.0  ;;  %vm1919_vm14 = vcmp.gt.f32.partialorder %v1873_v46, 20.0 }
 0x65a   :  { %v1929_v10 = vmul.f32 1.442695, %v1912_v19  ;;  %v2573_v36 = vpop.f32.mrb[18].mxu0 }
 0x65b   :  { %v1927_v35 = vmul.f32 1.442695, %v1911_v29  ;;  %v3742_v12 = vadd.f32 %v2573_v36, %v2391_v8  ;;  %v1882_v59 = vpop.f32.mrb[19].mxu0 }
 0x65c   :  { %2845 = vpow2.f32 %v1929_v10  ;;  %v3744_v2 = vadd.f32 %v2391_v8, %v1882_v59 }
 0x65d   :  { %2847 = vpow2.f32 %v1927_v35  ;;  %v1914_v42 = vmin.f32 %v3742_v12, 20.0  ;;  %vm1922_vm1 = vcmp.gt.f32.partialorder %v3742_v12, 20.0 }
 0x65e   :  { %v1913_v55 = vmin.f32 %v3744_v2, 20.0  ;;  %vm1921_vm0 = vcmp.gt.f32.partialorder %v3744_v2, 20.0 }
 0x65f   :  { %v1933_v51 = vmul.f32 1.442695, %v1914_v42 }
 0x660   :  { %v1931_v40 = vmul.f32 1.442695, %v1913_v55 }
 0x661   :  { %2849 = vpow2.f32 %v1933_v51 }
 0x662   :  { %2851 = vpow2.f32 %v1931_v40  ;;  %v2576_v37 = vpop.f32.mrb[20].mxu0 }
 0x663   :  { %v3748_v41 = vadd.f32 %v2576_v37, %v2391_v8  ;;  %v1892_v21 = vpop.f32.mrb[21].mxu0 }
 0x664   :  { %v3750_v47 = vadd.f32 %v2391_v8, %v1892_v21 }
 0x665   :  { %v1916_v16 = vmin.f32 %v3748_v41, 20.0  ;;  %vm1924_vm3 = vcmp.gt.f32.partialorder %v3748_v41, 20.0 }
 0x666   :  { %v2846_v61 = vpop.eup %2845  ;;  %v1915_v50 = vmin.f32 %v3750_v47, 20.0  ;;  %vm1923_vm2 = vcmp.gt.f32.partialorder %v3750_v47, 20.0 }
 0x667   :  { %v2848_v24 = vpop.eup %2847  ;;  %v1944_v14 = vadd.f32 1.0, %v2846_v61  ;;  %v1937_v7 = vmul.f32 1.442695, %v1916_v16 }
 0x668   :  { %v1943_v26 = vadd.f32 1.0, %v2848_v24  ;;  %v1935_v34 = vmul.f32 1.442695, %v1915_v50 }
 0x669   :  { %2853 = vlog2.f32 %v1944_v14 }
 0x66a   :  { %2855 = vlog2.f32 %v1943_v26 }
 0x66b   :  { %v2850_v39 = vpop.eup %2849  ;;  %2857 = vpow2.f32 %v1937_v7 }
 0x66c   :  { %v2852_v53 = vpop.eup %2851  ;;  %v1946_v31 = vadd.f32 1.0, %v2850_v39  ;;  %2859 = vpow2.f32 %v1935_v34 }
 0x66d   :  { %v1945_v20 = vadd.f32 1.0, %v2852_v53 }
 0x66e   :  { %2861 = vlog2.f32 %v1946_v31 }
 0x66f   :  { %2863 = vlog2.f32 %v1945_v20  ;;  %v2579_v30 = vpop.f32.mrb[22].mxu0 }
 0x670   :  { %v3754_v11 = vadd.f32 %v2579_v30, %v2391_v8  ;;  %v1902_v49 = vpop.f32.mrb[23].mxu0 }
 0x671   :  { %v3756_v58 = vadd.f32 %v2391_v8, %v1902_v49 }
 0x672   :  { %v1918_v22 = vmin.f32 %v3754_v11, 20.0  ;;  %vm1926_vm5 = vcmp.gt.f32.partialorder %v3754_v11, 20.0 }
 0x673   :  { %v2854_v56 = vpop.eup %2853  ;;  %v1917_v27 = vmin.f32 %v3756_v58, 20.0  ;;  %vm1925_vm4 = vcmp.gt.f32.partialorder %v3756_v58, 20.0 }
 0x674   :  { %v2856_v9 = vpop.eup %2855  ;;  %v1954_v4 = vmul.f32 0.6931472, %v2854_v56  ;;  %v1941_v57 = vmul.f32 1.442695, %v1918_v22 }
 0x675   :  { %v2858_v0 = vpop.eup %2857  ;;  %v1939_v17 = vmul.f32 1.442695, %v1917_v27  ;;  %v1952_v62 = vmul.f32 0.6931472, %v2856_v9 }
 0x676   :  { %v2860_v44 = vpop.eup %2859  ;;  %v1948_v23 = vadd.f32 1.0, %v2858_v0  ;;  %2865 = vpow2.f32 %v1941_v57  ;;  %v1968_v45 = vsel %vm1920_vm15, %v3739_v38, %v1954_v4 }
 0x677   :  { %v1947_v33 = vadd.f32 1.0, %v2860_v44  ;;  %2867 = vpow2.f32 %v1939_v17  ;;  %v1967_v5 = vsel %vm1919_vm14, %v1873_v46, %v1952_v62 }
 0x678   :  { %v2862_v3 = vpop.eup %2861  ;;  %2869 = vlog2.f32 %v1948_v23  ;;  %2582 = vmatprep.mubr.msk.f32.mxu1 %vm770_vm10, %v1967_v5  ;;  %2596 = vmatprep.mubr.msk.f32.mxu0 %vm770_vm10, %v1967_v5 }
 0x679   :  { %v2864_v32 = vpop.eup %2863  ;;  %2871 = vlog2.f32 %v1947_v33  ;;  %2583 = vmatmul.mubr.msk.f32.vlgmr.msra.gmra.mrb[16].mxu1 %vm770_vm10, %v1968_v45  ;;  %2597 = vmatmul.mubr.msk.f32.vlgmr.msra.gmra.mrb[24].mxu0 %vm770_vm10, %v1968_v45  ;;  %v1958_v13 = vmul.f32 0.6931472, %v2862_v3 }
 0x67a   :  { %2609 = vmatpush3.msra.mxu1 %v3733_v18  ;;  %v1956_v52 = vmul.f32 0.6931472, %v2864_v32 }
 0x67b   :  { %v1970_v54 = vsel %vm1922_vm1, %v3742_v12, %v1958_v13 }
 0x67c   :  { %v1969_v8 = vsel %vm1921_vm0, %v3744_v2, %v1956_v52 }
 0x67d   :  { %2585 = vmatprep.mubr.msk.f32.mxu1 %vm770_vm10, %v1969_v8  ;;  %2599 = vmatprep.mubr.msk.f32.mxu0 %vm770_vm10, %v1969_v8 }
 0x67e   :  { %2586 = vmatmul.mubr.msk.f32.gmra.mrb[18].mxu1 %vm770_vm10, %v1970_v54  ;;  %2600 = vmatmul.mubr.msk.f32.gmra.mrb[26].mxu0 %vm770_vm10, %v1970_v54 }
 0x680   :  { %v2866_v38 = vpop.eup %2865 }
 0x681   :  { %v2868_v43 = vpop.eup %2867  ;;  %v1950_v18 = vadd.f32 1.0, %v2866_v38 }
 0x682   :  { %v2870_v46 = vpop.eup %2869  ;;  %v1949_v19 = vadd.f32 1.0, %v2868_v43 }
 0x683   :  { %v2872_v29 = vpop.eup %2871  ;;  %2873 = vlog2.f32 %v1950_v18  ;;  %v1962_v10 = vmul.f32 0.6931472, %v2870_v46 }
 0x684   :  { %2875 = vlog2.f32 %v1949_v19  ;;  %v1960_v36 = vmul.f32 0.6931472, %v2872_v29 }
 0x685   :  { %v1972_v12 = vsel %vm1924_vm3, %v3748_v41, %v1962_v10 }
 0x686   :  { %v1971_v35 = vsel %vm1923_vm2, %v3750_v47, %v1960_v36 }
 0x687   :  { %2588 = vmatprep.mubr.msk.f32.mxu1 %vm770_vm10, %v1971_v35  ;;  %2602 = vmatprep.mubr.msk.f32.mxu0 %vm770_vm10, %v1971_v35 }
 0x688   :  { %2589 = vmatmul.mubr.msk.f32.gmra.mrb[20].mxu1 %vm770_vm10, %v1972_v12  ;;  %2603 = vmatmul.mubr.msk.f32.gmra.mrb[28].mxu0 %vm770_vm10, %v1972_v12 }
 0x68d   :  { %v2874_v59 = vpop.eup %2873 }
 0x68e   :  { %v2876_v2 = vpop.eup %2875  ;;  %v1966_v42 = vmul.f32 0.6931472, %v2874_v59 }
 0x68f   :  { %v1964_v55 = vmul.f32 0.6931472, %v2876_v2 }
 0x690   :  { %v1974_v40 = vsel %vm1926_vm5, %v3754_v11, %v1966_v42 }
 0x691   :  { %v1973_v51 = vsel %vm1925_vm4, %v3756_v58, %v1964_v55 }
 0x692   :  { %2591 = vmatprep.mubr.msk.f32.mxu1 %vm770_vm10, %v1973_v51  ;;  %2605 = vmatprep.mubr.msk.f32.mxu0 %vm770_vm10, %v1973_v51 }
 0x693   :  { %2592 = vmatmul.mubr.msk.f32.gmra.mrb[22].mxu1 %vm770_vm10, %v1974_v40  ;;  %2606 = vmatmul.mubr.msk.f32.gmra.mrb[30].mxu0 %vm770_vm10, %v1974_v40 }
 0x694   :  { %2610 = vmatprep.mubr.msk.f32.mxu1 %vm770_vm10, %v3567_v60 }
 0x697   :  { %2611 = vmatmul.mubr.msk.f32.vlgmr.msra.gmra.mrb[24].mxu1 %vm770_vm10, %v3573_v6 }
 0x698   :  { %2613 = vmatprep.mubr.msk.f32.mxu1 %vm770_vm10, %v3575_v1 }
 0x69b   :  { %2614 = vmatmul.mubr.msk.f32.gmra.mrb[26].mxu1 %vm770_vm10, %v3583_v15 }
 0x69c   :  { %2616 = vmatprep.mubr.msk.f32.mxu1 %vm770_vm10, %v3593_v25 }
 0x69f   :  { %2617 = vmatmul.mubr.msk.f32.gmra.mrb[28].mxu1 %vm770_vm10, %v3590_v63 }
 0x6a0   :  { %2619 = vmatprep.mubr.msk.f32.mxu1 %vm770_vm10, %v3601_v48 }
 0x6a3   :  { %2620 = vmatmul.mubr.msk.f32.gmra.mrb[30].mxu1 %vm770_vm10, %v3599_v28 }
 0x74c   :  { %v2584_v60 = vpop.f32.mrb[16].mxu1  ;;  %v2598_v6 = vpop.f32.mrb[24].mxu0 }
 0x74d   :  { %v2215_v37 = vmul.f32 %v2598_v6, %v2584_v60  ;;  %v2068_v41 = vpop.f32.mrb[17].mxu1  ;;  %v2175_v1 = vpop.f32.mrb[25].mxu0 }
 0x74e   :  { %v2214_v21 = vmul.f32 %v2175_v1, %v2068_v41 }
 0x751   :  { %v2587_v47 = vpop.f32.mrb[18].mxu1  ;;  %v2601_v15 = vpop.f32.mrb[26].mxu0 }
 0x752   :  { %v2217_v16 = vmul.f32 %v2601_v15, %v2587_v47  ;;  %v2078_v61 = vpop.f32.mrb[19].mxu1  ;;  %v2185_v25 = vpop.f32.mrb[27].mxu0 }
 0x753   :  { %v2216_v50 = vmul.f32 %v2185_v25, %v2078_v61 }
 0x75b   :  { %v2590_v24 = vpop.f32.mrb[20].mxu1  ;;  %v2604_v63 = vpop.f32.mrb[28].mxu0 }
 0x75c   :  { %v2219_v14 = vmul.f32 %v2604_v63, %v2590_v24  ;;  %v2088_v7 = vpop.f32.mrb[21].mxu1  ;;  %v2195_v48 = vpop.f32.mrb[29].mxu0 }
 0x75d   :  { %v2218_v26 = vmul.f32 %v2195_v48, %v2088_v7 }
 0x766   :  { %v2593_v34 = vpop.f32.mrb[22].mxu1  ;;  %v2607_v28 = vpop.f32.mrb[30].mxu0 }
 0x767   :  { %v2221_v39 = vmul.f32 %v2607_v28, %v2593_v34  ;;  %v2098_v53 = vpop.f32.mrb[23].mxu1  ;;  %v2205_v31 = vpop.f32.mrb[31].mxu0 }
 0x768   :  { %v2220_v20 = vmul.f32 %v2205_v31, %v2098_v53 }
 0x76a   :  { %v2612_v30 = vpop.f32.mrb[24].mxu1 }
 0x76b   :  { %v2310_v11 = vadd.f32 %v2612_v30, %v2215_v37  ;;  %v2304_v49 = vpop.f32.mrb[25].mxu1 }
 0x76c   :  { %v2305_v58 = vadd.f32 %v2304_v49, %v2214_v21 }
 0x76d   :  { %2344 = vst [vmem:[%s3843_s12 + $0x8] sm:$0xff] %v2310_v11 }
 0x76e   :  { %2343 = vst [vmem:[%s3843_s12] sm:$0xff] %v2305_v58  ;;  %v2615_v22 = vpop.f32.mrb[26].mxu1 }
 0x76f   :  { %v2320_v56 = vadd.f32 %v2615_v22, %v2217_v16  ;;  %v2314_v27 = vpop.f32.mrb[27].mxu1 }
 0x770   :  { %v2315_v9 = vadd.f32 %v2314_v27, %v2216_v50 }
 0x771   :  { %2346 = vst [vmem:[%s3843_s12 + $0x18] sm:$0xff] %v2320_v56 }
 0x772   :  { %2345 = vst [vmem:[%s3843_s12 + $0x10] sm:$0xff] %v2315_v9  ;;  %v2618_v4 = vpop.f32.mrb[28].mxu1 }
 0x773   :  { %v2330_v57 = vadd.f32 %v2618_v4, %v2219_v14  ;;  %v2324_v0 = vpop.f32.mrb[29].mxu1 }
 0x774   :  { %v2325_v17 = vadd.f32 %v2324_v0, %v2218_v26 }
 0x775   :  { %2348 = vst [vmem:[%s3843_s12 + $0x28] sm:$0xff] %v2330_v57 }
 0x776   :  { %2347 = vst [vmem:[%s3843_s12 + $0x20] sm:$0xff] %v2325_v17  ;;  %v2621_v62 = vpop.f32.mrb[30].mxu1 }
 0x777   :  { %v2340_v44 = vadd.f32 %v2621_v62, %v2221_v39  ;;  %v2334_v23 = vpop.f32.mrb[31].mxu1 }
 0x778   :  { %v2335_v33 = vadd.f32 %v2334_v23, %v2220_v20 }
 0x779   :  { %2350 = vst [vmem:[%s3843_s12 + $0x38] sm:$0xff] %v2340_v44 }
 0x77a   :  { %2349 = vst [vmem:[%s3843_s12 + $0x30] sm:$0xff] %v2335_v33 }

</bundles_post_ra>
